<compile_context>
chip_gen: v6e
topology: v6e:2x2x1
jax: 0.10.0
libtpu: 0.0.40
codegen_flags: <defaults>
</compile_context>

<pallas_src>
import functools

import jax
import jax.numpy as jnp
from jax.experimental import pallas as pl
from jax.experimental.pallas import tpu as pltpu


LANE = 128  # TPU lane width; feature channels are zero-padded to this


def _round_up(x, m):
    return (x + m - 1) // m * m


# ----------------------------- visual net kernel -----------------------------

def _vidual_kernel(p_ref, w_ref, b_ref, o_ref, *, hw, sb):
    # p_ref: (bb, HW, K) bf16 im2col patches (K = 9*Cin) for bb samples
    # w_ref: (K, CD)    bf16 conv weights, Cout zero-padded to CD (=128) lanes
    # b_ref: (1, CD)    f32 bias (zero-padded)
    # o_ref: (bb, CD)   f32 pooled feature vectors
    bb, _, k = p_ref.shape
    cd = o_ref.shape[1]
    n_sub = bb // sb
    rows = sb * hw

    # Segmented average-pool matrix (built once per grid step, hoisted out of
    # the loop): pool_mat[s, r] = 1/HW iff flattened row r belongs to sample s.
    # Pooling via this MXU contraction keeps the output (rows, CD) lane-dense
    # and moves ~HW adds/output off the VPU (v5e relief).
    r_idx = jax.lax.broadcasted_iota(jnp.int32, (sb, rows), 1)
    s_idx = jax.lax.broadcasted_iota(jnp.int32, (sb, rows), 0)
    in_seg = (r_idx >= s_idx * hw) & (r_idx < (s_idx + 1) * hw)
    pool_mat = jnp.where(in_seg, 1.0 / hw, 0.0).astype(jnp.float32)

    w = w_ref[...]
    bias = b_ref[...]

    def body(j, carry):
        j0 = pl.multiple_of(j * sb, sb)                       # sublane-aligned
        patches = p_ref[pl.ds(j0, sb), :, :].reshape(rows, k)  # (sb*HW, K) bf16
        acc = jnp.dot(patches, w, preferred_element_type=jnp.float32)
        acc = jnp.maximum(acc + bias, 0.0)                    # bias + ReLU (f32)
        pooled = jnp.dot(pool_mat, acc,                       # global avg pool
                         preferred_element_type=jnp.float32)  # (sb, CD)
        o_ref[pl.ds(j0, sb), :] = pooled
        return carry

    jax.lax.fori_loop(0, n_sub, body, 0)


def _choose_row_block(total_rows):
    """Samples per grid step: multiple of 8, capped at 32 (v7x VMEM headroom),
    and split into >=2 grid blocks whenever the batch allows it so v7x's two
    TensorCores both get work.  total_rows is always a multiple of 32."""
    if total_rows >= 64:
        return 32
    return max(8, total_rows // 2)


def _choose_subgroup(hw, cd):
    """Samples per inner chunk: keep the pre-pool f32 intermediate <= ~4 MiB."""
    sb = 8
    while sb > 1 and sb * hw * cd * 4 > (4 << 20):
        sb //= 2
    return sb


def vidual_net_forward(x_nchw, w_hwio, b, cd=LANE):
    """Conv2d(k=3, pad=1) -> ReLU -> global avg pool over a stacked batch.

    Returns (B, cd) f32; channels >= w_hwio.shape[3] are zero (zero weights
    and zero bias in the padding => exactly zero, so downstream loss math is
    unaffected by the lane padding).
    """
    B, C, H, W = x_nchw.shape            # B is a multiple of 32 by construction
    Cout = w_hwio.shape[3]
    K = 9 * C
    HW = H * W

    # Host-side im2col producer chain (fused into the pallas_call operand via
    # allow_input_fusion): NCHW -> NHWC, zero-pad spatially by 1, 9-slice
    # concat with (kh, kw, cin) minor ordering, cast to bf16.
    # TODO(synk): a fully in-kernel im2col (DMA the raw padded image) would cut
    # operand bytes another ~9x, but with Cin=4 every MXU-friendly layout needs
    # lane<->sublane relayouts in VMEM; left to a follow-up.
    x = jnp.transpose(x_nchw, (0, 2, 3, 1)).astype(jnp.float32)
    xp = jnp.pad(x, ((0, 0), (1, 1), (1, 1), (0, 0)))
    patches = jnp.concatenate(
        [xp[:, kh:kh + H, kw:kw + W, :] for kh in range(3) for kw in range(3)],
        axis=-1).reshape(B, HW, K).astype(jnp.bfloat16)

    w_mat = w_hwio.astype(jnp.float32).reshape(K, Cout)
    w_mat = jnp.pad(w_mat, ((0, 0), (0, cd - Cout))).astype(jnp.bfloat16)
    b_pad = jnp.pad(b.astype(jnp.float32), (0, cd - Cout)).reshape(1, cd)

    b_blk = _choose_row_block(B)
    sb = _choose_subgroup(HW, cd)

    kernel = functools.partial(_vidual_kernel, hw=HW, sb=sb)
    return pl.pallas_call(
        kernel,
        out_shape=jax.ShapeDtypeStruct((B, cd), jnp.float32),
        grid=(B // b_blk,),
        in_specs=[
            pl.BlockSpec((b_blk, HW, K), lambda i: (i, 0, 0)),
            pl.BlockSpec((K, cd), lambda i: (0, 0)),
            pl.BlockSpec((1, cd), lambda i: (0, 0)),
        ],
        out_specs=pl.BlockSpec((b_blk, cd), lambda i: (i, 0)),
        compiler_params=pltpu.CompilerParams(
            dimension_semantics=("parallel",),
            allow_input_fusion=[True, False, False]),
    )(patches, w_mat, b_pad)


# --------------------------- distance / loss kernel ---------------------------

def _loss_kernel(feat_ref, rn_ref, rf_ref, o_ref, *, n_pad, d):
    # feat_ref: (4*n_pad, d) pooled visual features; group g occupies rows
    #           [g*n_pad, g*n_pad+n) with g in {x_near, y_near, x_far, y_far};
    #           channels >= Cout are exactly zero.
    # rn_ref / rf_ref: (n_pad, 2*d) relational embeddings; halves at lanes
    #           [0:d) and [d:2d), each half zero-padded past Cout.
    # o_ref:    (n_pad, 1) hinge loss (rows >= n are padding, sliced off later).
    eps2 = 1e-24  # (1e-12)^2 -> matches F.normalize(eps=1e-12)

    def l2normalize(v):
        sq = jnp.sum(v * v, axis=1, keepdims=True)
        return v * jax.lax.rsqrt(jnp.maximum(sq, eps2))   # v / max(||v||, eps)

    feat = feat_ref[...]
    xn = l2normalize(feat[0 * n_pad:1 * n_pad])
    yn = l2normalize(feat[1 * n_pad:2 * n_pad])
    xf = l2normalize(feat[2 * n_pad:3 * n_pad])
    yf = l2normalize(feat[3 * n_pad:4 * n_pad])

    def dist(vn, wn, r_raw):
        # Reference (with the [v, v] concat bug preserved):
        #   x = [vn, vn], y = [wn, wn], r = [r_lo, r_hi] jointly normalized
        #   ||x||^2 + ||y||^2 + ||r||^2 - 2 x.y - 2 (y-x).r == ||x - y + r||^2
        #   == ||vn - wn + r_lo||^2 + ||vn - wn + r_hi||^2   (robust form)
        r = l2normalize(r_raw)
        diff = vn - wn
        a = diff + r[:, :d]
        c = diff + r[:, d:]
        return jnp.sum(a * a + c * c, axis=1, keepdims=True)

    d_near = dist(xn, yn, rn_ref[...])
    d_far = dist(xf, yf, rf_ref[...])
    o_ref[...] = jnp.maximum(d_near - d_far + 1.0, 0.0)       # hinge, margin=1.0


def loss_forward(feat, rn_pad, rf_pad):
    rows, cd = feat.shape
    n_pad = rn_pad.shape[0]
    kernel = functools.partial(_loss_kernel, n_pad=n_pad, d=cd)
    return pl.pallas_call(
        kernel,
        out_shape=jax.ShapeDtypeStruct((n_pad, 1), jnp.float32),
        grid=(1,),
        in_specs=[
            pl.BlockSpec((rows, cd), lambda i: (0, 0)),
            pl.BlockSpec((n_pad, 2 * cd), lambda i: (0, 0)),
            pl.BlockSpec((n_pad, 2 * cd), lambda i: (0, 0)),
        ],
        out_specs=pl.BlockSpec((n_pad, 1), lambda i: (0, 0)),
    )(feat, rn_pad, rf_pad)


# ------------------------------- full forward --------------------------------

def trans_nfcm_forward(params,
                       x_near, y_near, x_far, y_far,
                       x_near_cat, y_near_cat, x_far_cat, y_far_cat,
                       near_relational_tag, far_relational_tag):
    # Tag embeddings (params["tag_emb"], *_cat) are dead in the reference
    # forward: calculate_VT_encoded_vec concatenates v_vec with itself, so the
    # tag vectors never influence the output.  They are not computed here.
    del x_near_cat, y_near_cat, x_far_cat, y_far_cat

    w, b = params["conv_w"], params["conv_b"]
    rel_tbl = params["rel_emb"]
    n = x_near.shape[0]
    emb = w.shape[3]
    cd = max(LANE, _round_up(emb, LANE))
    n_pad = _round_up(n, 8)        # per-group row padding -> aligned quarters

    def pad_group(g):
        return jnp.pad(g, ((0, n_pad - n), (0, 0), (0, 0), (0, 0)))

    # One stacked visual-net pallas_call: [x_near; y_near; x_far; y_far],
    # each group padded to a multiple of 8 rows (sublane-aligned slices later).
    stacked = jnp.concatenate(
        [pad_group(x_near), pad_group(y_near), pad_group(x_far), pad_group(y_far)],
        axis=0)
    feat = vidual_net_forward(stacked, w, b, cd=cd)          # (4*n_pad, cd)

    # Relational embeddings: tiny gather kept as JAX glue; each half is
    # zero-padded to cd lanes and rows padded to n_pad (the padded feature
    # channels are exactly zero, so lane padding does not change the math).
    def gather_pad(tags):
        r = jnp.take(rel_tbl, tags, axis=0).astype(jnp.float32)   # (n, 2*emb)
        r = jnp.pad(r, ((0, n_pad - n), (0, 0)))
        lo, hi = r[:, :emb], r[:, emb:]
        z = jnp.zeros((n_pad, cd - emb), jnp.float32)
        return jnp.concatenate([lo, z, hi, z], axis=1)            # (n_pad, 2*cd)

    rn_p = gather_pad(near_relational_tag)
    rf_p = gather_pad(far_relational_tag)

    # Fused normalize + VT-encode + TransNFCM distance + hinge (Pallas kernel).
    loss_pad = loss_forward(feat, rn_p, rf_p)                # (n_pad, 1)
    return loss_pad[:n]


# ---------------------------------- driver -----------------------------------

if __name__ == "__main__":
    N = 2            # batch
    IN_CH = 4        # image channels
    HW = 16          # spatial
    EMB = 32         # embedding_dim (VidualNet out_ch == embedding_dim)
    N_REL = 5
    N_TAG = 10

    key = jax.random.PRNGKey(0)
    keys = jax.random.split(key, 10)

    params = {
        "conv_w": 0.1 * jax.random.normal(keys[0], (3, 3, IN_CH, EMB), jnp.float32),
        "conv_b": 0.1 * jax.random.normal(keys[1], (EMB,), jnp.float32),
        "tag_emb": jax.random.normal(keys[2], (N_TAG, EMB), jnp.float32),
        "rel_emb": jax.random.normal(keys[3], (N_REL, 2 * EMB), jnp.float32),
    }

    x_near = jax.random.normal(keys[4], (N, IN_CH, HW, HW), jnp.float32)
    y_near = jax.random.normal(keys[5], (N, IN_CH, HW, HW), jnp.float32)
    x_far = jax.random.normal(keys[6], (N, IN_CH, HW, HW), jnp.float32)
    y_far = jax.random.normal(keys[7], (N, IN_CH, HW, HW), jnp.float32)

    x_near_cat = jnp.array([0, 1], jnp.int32)
    y_near_cat = jnp.array([1, 2], jnp.int32)
    x_far_cat = jnp.array([3, 4], jnp.int32)
    y_far_cat = jnp.array([5, 6], jnp.int32)
    near_rel = jnp.array([0, 1], jnp.int32)
    far_rel = jnp.array([2, 3], jnp.int32)

    loss = trans_nfcm_forward(
        params, x_near, y_near, x_far, y_far,
        x_near_cat, y_near_cat, x_far_cat, y_far_cat,
        near_rel, far_rel)
    loss = jax.block_until_ready(loss)
    assert loss.shape == (N, 1) and loss.dtype == jnp.float32
    assert bool(jnp.all(jnp.isfinite(loss)))
    print("KERNEL_OK")
</pallas_src>

<mosaic_0001>
module attributes {stable_mosaic.version = 11 : i64} {
  func.func @_vidual_kernel(%arg0: i32, %arg1: memref<16x256x36xbf16, #tpu.memory_space<vmem>>, %arg2: memref<36x128xbf16, #tpu.memory_space<vmem>>, %arg3: memref<1x128xf32, #tpu.memory_space<vmem>>, %arg4: memref<16x128xf32, #tpu.memory_space<vmem>>) attributes {dimension_semantics = [#tpu.dimension_semantics<parallel>], iteration_bounds = array<i64: 2>, scalar_prefetch = 0 : i64, scratch_operands = 0 : i64, tpu.core_type = #tpu.core_type<tc>, window_params = [{transform_indices = @transform_0, window_bounds = array<i64: 16, 256, 36>}, {pipeline_mode = #tpu.pipeline_mode<synchronous>, transform_indices = @transform_1, window_bounds = array<i64: 36, 128>}, {pipeline_mode = #tpu.pipeline_mode<synchronous>, transform_indices = @transform_2, window_bounds = array<i64: 1, 128>}, {transform_indices = @transform_3, window_bounds = array<i64: 16, 128>}]} {
    %0 = tpu.iota {dimensions = array<i32: 1>} : vector<8x2048xi32>
    %1 = tpu.iota {dimensions = array<i32: 0>} : vector<8x2048xi32>
    %c256_i32 = arith.constant 256 : i32
    %2 = vector.broadcast %c256_i32 : i32 to vector<8x2048xi32>
    %3 = arith.muli %1, %2 : vector<8x2048xi32>
    %4 = arith.cmpi sge, %0, %3 : vector<8x2048xi32>
    %c1_i32 = arith.constant 1 : i32
    %5 = vector.broadcast %c1_i32 : i32 to vector<8x2048xi32>
    %6 = arith.addi %1, %5 : vector<8x2048xi32>
    %c256_i32_0 = arith.constant 256 : i32
    %7 = vector.broadcast %c256_i32_0 : i32 to vector<8x2048xi32>
    %8 = arith.muli %6, %7 : vector<8x2048xi32>
    %9 = arith.cmpi slt, %0, %8 : vector<8x2048xi32>
    %10 = arith.andi %4, %9 : vector<8x2048xi1>
    %cst = arith.constant 3.906250e-03 : f32
    %cst_1 = arith.constant 0.000000e+00 : f32
    %11 = vector.broadcast %cst : f32 to vector<8x2048xf32>
    %12 = vector.broadcast %cst_1 : f32 to vector<8x2048xf32>
    %13 = arith.select %10, %11, %12 : vector<8x2048xi1>, vector<8x2048xf32>
    %c0 = arith.constant 0 : index
    %c0_2 = arith.constant 0 : index
    %14 = vector.load %arg2[%c0, %c0_2] : memref<36x128xbf16, #tpu.memory_space<vmem>>, vector<36x128xbf16>
    %c0_3 = arith.constant 0 : index
    %c0_4 = arith.constant 0 : index
    %15 = vector.load %arg3[%c0_3, %c0_4] : memref<1x128xf32, #tpu.memory_space<vmem>>, vector<1x128xf32>
    %c0_i32 = arith.constant 0 : i32
    %c2_i32 = arith.constant 2 : i32
    %16 = arith.addi %c0_i32, %c2_i32 : i32
    %c1_i32_5 = arith.constant 1 : i32
    scf.for %arg5 = %c0_i32 to %16 step %c1_i32_5  : i32 {
      %c8_i32 = arith.constant 8 : i32
      %17 = arith.muli %arg5, %c8_i32 : i32
      %18 = tpu.assume_multiple %17, 8 : i32
      %19 = arith.index_cast %18 : i32 to index
      %c0_7 = arith.constant 0 : index
      %c0_8 = arith.constant 0 : index
      %20 = vector.load %arg1[%19, %c0_7, %c0_8] : memref<16x256x36xbf16, #tpu.memory_space<vmem>>, vector<8x256x36xbf16>
      %21 = vector.shape_cast %20 : vector<8x256x36xbf16> to vector<2048x36xbf16>
      %cst_9 = arith.constant dense<0.000000e+00> : vector<2048x128xf32>
      %22 = tpu.matmul %21, %14, %cst_9 {dimension_numbers = #tpu.dot_dimension_numbers<[1], [0], [0], [1], [0, 0, 1, 1], [], []>} : vector<2048x36xbf16>, vector<36x128xbf16>, vector<2048x128xf32> -> vector<2048x128xf32>
      %23 = vector.broadcast %15 : vector<1x128xf32> to vector<2048x128xf32>
      %24 = arith.addf %22, %23 : vector<2048x128xf32>
      %cst_10 = arith.constant 0.000000e+00 : f32
      %25 = vector.broadcast %cst_10 : f32 to vector<2048x128xf32>
      %26 = arith.maximumf %24, %25 : vector<2048x128xf32>
      %cst_11 = arith.constant dense<0.000000e+00> : vector<8x128xf32>
      %27 = tpu.matmul %13, %26, %cst_11 {dimension_numbers = #tpu.dot_dimension_numbers<[1], [0], [0], [1], [0, 0, 1, 1], [], []>} : vector<8x2048xf32>, vector<2048x128xf32>, vector<8x128xf32> -> vector<8x128xf32>
      %28 = arith.index_cast %18 : i32 to index
      %c0_12 = arith.constant 0 : index
      %29 = vector.load %arg4[%28, %c0_12] : memref<16x128xf32, #tpu.memory_space<vmem>>, vector<8x128xf32>
      tpu.vector_store %arg4[%28, %c0_12], %27 {strides = array<i32>} : memref<16x128xf32, #tpu.memory_space<vmem>>, vector<8x128xf32>,
    }
    %c2_i32_6 = arith.constant 2 : i32
    return
  }
  func.func @transform_0(%arg0: i32) -> (i32, i32, i32) {
    %c0_i32 = arith.constant 0 : i32
    %c0_i32_0 = arith.constant 0 : i32
    %c0_i32_1 = arith.constant 0 : i32
    return %arg0, %c0_i32, %c0_i32_0 : i32, i32, i32
  }
  func.func @transform_1(%arg0: i32) -> (i32, i32) {
    %c0_i32 = arith.constant 0 : i32
    %c0_i32_0 = arith.constant 0 : i32
    %c0_i32_1 = arith.constant 0 : i32
    return %c0_i32, %c0_i32_0 : i32, i32
  }
  func.func @transform_2(%arg0: i32) -> (i32, i32) {
    %c0_i32 = arith.constant 0 : i32
    %c0_i32_0 = arith.constant 0 : i32
    %c0_i32_1 = arith.constant 0 : i32
    return %c0_i32, %c0_i32_0 : i32, i32
  }
  func.func @transform_3(%arg0: i32) -> (i32, i32) {
    %c0_i32 = arith.constant 0 : i32
    %c0_i32_0 = arith.constant 0 : i32
    return %arg0, %c0_i32 : i32, i32
  }
}

</mosaic_0001>

<bundles_post_ra>
// kernel: tpu_custom_call.1
= control target key start
LH: loop header
LB: loop body
LE: loop exit
PB: predicated region body
PF: predicated region fallthrough
CT: control target
= control target key end

     0   :  { %8 = vsyncpa [#allocation3], 0  ;;  %s6140_s0 = inlined_call_operand.vmem [shape: bf16[32,256,36], index: 0, kind: input, shape index: {}]   ;;  %s6141_s1 = inlined_call_operand.vmem [shape: bf16[36,128], index: 1, kind: input, shape index: {}]   ;;  %s6142_s2 = inlined_call_operand.vmem [shape: f32[1,128], index: 2, kind: input, shape index: {}]   ;;  %s6143_s3 = inlined_call_operand.hbm [shape: f32[32,128], index: 3, kind: output, shape index: {}]  }
   0x1   :  { %10 = vsyncpa [#allocation3 + $0x1], 0  ;;  %s4793_s12 = smov 0   ;;  %s4795_s13 = smov 0  }
   0x2   :  { %s4797_s14 = smov 0   ;;  %s4799_s15 = smov 0  }
   0x3 LB: > { %s4814_s16 = sadd.s32 4294967295, %s4763_s15   ;;  %s3544_s17 = sadd.s32 4294967294, %s4763_s15   ;;  %s4763_s15 = sphi %s4799_s15, %s6292_s15   ;;  %s4759_s14 = sphi %s4797_s14, %s6291_s14   ;;  %s4755_s13 = sphi %s4795_s13, %s6290_s13   ;;  %s4751_s12 = sphi %s4793_s12, %s6289_s12  }
   0x4   : > { %s4818_s18 = sadd.s32 1, %s4763_s15   ;;  %s91_s19 = sadd.s32 1, %s4759_s14 }
   0x5   : > { %s88_s20 = ssub.s32 %s4763_s15, %s4818_s18  ;;  %p101_p0 = scmp.ne.s32.totalorder %s4759_s14, %s4755_s13 }
   0x6   : > { %p89_p1 = scmp.eq.s32.totalorder %s88_s20, 0  ;;  %p102_p2 = scmp.eq.s32.totalorder %s4814_s16, 1 }
   0x7   : > { %p107_p3 = scmp.ne.s32.totalorder %s4755_s13, %s4751_s12  ;;  %p108_p4 = scmp.eq.s32.totalorder %s3544_s17, 1 }
   0x8   : > { %s4829_s21 = scalar_select %p89_p1, %s4759_s14, %s91_s19  }
   0x9   : > { %p4831_p5 = por %p102_p2, %p101_p0  ;;  %p4835_p6 = por %p108_p4, %p107_p3 }
   0xa   : > { %p3547_p7 = scmp.ge.s32.totalorder %s4763_s15, 1  ;;  %p142_p8 = scmp.lt.s32.totalorder %s4763_s15, 3 }
   0xc   : > { %p143_p9 = pnand %p3547_p7, %p142_p8 }
   0xe   : > { %146 = sbr.rel (%p143_p9) target bundleno = 931 (0x3a3), region = 32 }
  0x13   : > { %s164_s24 = sand.u32 1, %s4755_s13   ;;  %s3549_s25 = sshll.u32 %s4814_s16, 4  ;;  %v4846_v0 = vld [vmem:[%s6141_s1] sm:$0xf]  ;;  %v4851_v1 = vld [vmem:[%s6141_s1 + $0x4] sm:$0xf]  ;;  %v176_v2 = vlaneseq }
  0x14   : > { %6160 = vst [vmem:[#allocation5_spill] sm:$0xff] %v4846_v0  ;;  %6161 = vst [vmem:[#allocation6_spill] sm:$0xff] %v4851_v1  ;;  %s4855_s30 = sshll.u32 %s164_s24, 4  ;;  %p168_p10 = scmp.lt.s32.totalorder %s3549_s25, 31  ;;  %v4860_v3 = vld [vmem:[%s6141_s1 + $0x8] sm:$0xf] }
  0x15   : > { %6162 = vst [vmem:[#allocation7_spill] sm:$0xff] %v4860_v3  ;;  %v4865_v4 = vld [vmem:[%s6141_s1 + $0xc] sm:$0xf]  ;;  %v4870_v5 = vld [vmem:[%s6141_s1 + $0x10] sm:$0x3]  ;;  %v194_v7 = vshrl.u32 %v176_v2, 7 }
  0x16   : > { %6163 = vst [vmem:[#allocation8_spill] sm:$0xff] %v4865_v4  ;;  %6164 = vst [vmem:[#allocation9_spill] sm:$0xff] %v4870_v5  ;;  %s6294_s25 = smov (!%p168_p10, %s3549_s25), 31  ;;  %v4875_v6 = vld [vmem:[%s6142_s2] ss:$0 sm:$0xff]  ;;  %v177_v8 = vand.u32 127, %v176_v2 }
  0x17   : > { %s3836_s17 = sshll.u32 %s6294_s25, 7  ;;  %v4882_v9 = vmul.u32 256, %v194_v7  ;;  %v212_v10 = vadd.s32 1, %v194_v7  ;;  %v6165_v19 = vmov 0  ;;  %v6168_v21 = vmov 0  ;;  %s166_s25 = scalar_lea.vmem [#allocation2], %s4855_s30 }
  0x18   : > { %s4880_s26 = scalar_lea.vmem %s6140_s0, %s3836_s17  ;;  %v178_v11 = vadd.s32 128, %v177_v8  ;;  %v179_v12 = vadd.s32 256, %v177_v8  ;;  %v180_v13 = vadd.s32 384, %v177_v8  ;;  %v181_v14 = vadd.s32 512, %v177_v8  ;;  %s4967_s27 = smov 0  }
  0x19   : > { %vm196_vm0 = vcmp.ge.s32.totalorder %v177_v8, %v4882_v9  ;;  %v213_v15 = vmul.u32 256, %v212_v10  ;;  %v182_v16 = vadd.s32 640, %v177_v8  ;;  %v183_v17 = vadd.s32 768, %v177_v8 }
  0x1a   : > { %vm197_vm1 = vcmp.ge.s32.totalorder %v178_v11, %v4882_v9  ;;  %vm198_vm2 = vcmp.ge.s32.totalorder %v179_v12, %v4882_v9  ;;  %v184_v18 = vadd.s32 896, %v177_v8  ;;  %vm199_vm6 = vcmp.ge.s32.totalorder %v180_v13, %v4882_v9 }
  0x1b   : > { %vm214_vm3 = vcmp.lt.s32.totalorder %v177_v8, %v213_v15  ;;  %vm215_vm4 = vcmp.lt.s32.totalorder %v178_v11, %v213_v15  ;;  %vm216_vm5 = vcmp.lt.s32.totalorder %v179_v12, %v213_v15  ;;  %vm217_vm7 = vcmp.lt.s32.totalorder %v180_v13, %v213_v15 }
  0x1c   : > { %vm4888_vm8 = vmand %vm196_vm0, %vm214_vm3  ;;  %v185_v20 = vadd.s32 1024, %v177_v8  ;;  %vm200_vm9 = vcmp.ge.s32.totalorder %v181_v14, %v4882_v9  ;;  %vm218_vm10 = vcmp.lt.s32.totalorder %v181_v14, %v213_v15  ;;  %v186_v22 = vadd.s32 1152, %v177_v8 }
  0x1d   : > { %v6166_v19 = vsel %vm4888_vm8, 4294967295, %v6165_v19  ;;  %vm4893_vm11 = vmand %vm197_vm1, %vm215_vm4  ;;  %vm201_vm12 = vcmp.ge.s32.totalorder %v182_v16, %v4882_v9  ;;  %vm219_vm13 = vcmp.lt.s32.totalorder %v182_v16, %v213_v15  ;;  %v6171_v23 = vmov 0 }
  0x1e   : > { %6167 = vst [vmem:[#allocation10_spill] sm:$0xff] %v6166_v19  ;;  %v6169_v21 = vsel %vm4893_vm11, 4294967295, %v6168_v21  ;;  %vm4900_vm14 = vmand %vm198_vm2, %vm216_vm5  ;;  %v187_v24 = vadd.s32 1280, %v177_v8  ;;  %vm202_vm15 = vcmp.ge.s32.totalorder %v183_v17, %v4882_v9  ;;  %vm220_vm0 = vcmp.lt.s32.totalorder %v183_v17, %v213_v15 }
  0x1f   : > { %6170 = vst [vmem:[#allocation11_spill] sm:$0xff] %v6169_v21  ;;  %v6172_v23 = vsel %vm4900_vm14, 4294967295, %v6171_v23  ;;  %vm4905_vm3 = vmand %vm199_vm6, %vm217_vm7  ;;  %v6174_v25 = vmov 0  ;;  %v188_v26 = vadd.s32 1408, %v177_v8  ;;  %vm203_vm1 = vcmp.ge.s32.totalorder %v184_v18, %v4882_v9 }
  0x20   : > { %6173 = vst [vmem:[#allocation12_spill] sm:$0xff] %v6172_v23  ;;  %v6175_v25 = vsel %vm4905_vm3, 4294967295, %v6174_v25  ;;  %vm221_vm4 = vcmp.lt.s32.totalorder %v184_v18, %v213_v15  ;;  %vm4910_vm8 = vmand %vm200_vm9, %vm218_vm10  ;;  %v6177_v27 = vmov 0  ;;  %v189_v28 = vadd.s32 1536, %v177_v8 }
  0x21   : > { %6176 = vst [vmem:[#allocation13_spill] sm:$0xff] %v6175_v25  ;;  %v6178_v27 = vsel %vm4910_vm8, 4294967295, %v6177_v27  ;;  %vm204_vm2 = vcmp.ge.s32.totalorder %v185_v20, %v4882_v9  ;;  %vm222_vm5 = vcmp.lt.s32.totalorder %v185_v20, %v213_v15  ;;  %vm4915_vm14 = vmand %vm201_vm12, %vm219_vm13  ;;  %v6180_v29 = vmov 0 }
  0x22   : > { %6179 = vst [vmem:[#allocation14_spill] sm:$0xff] %v6178_v27  ;;  %v6181_v29 = vsel %vm4915_vm14, 4294967295, %v6180_v29  ;;  %v190_v30 = vadd.s32 1664, %v177_v8  ;;  %vm205_vm6 = vcmp.ge.s32.totalorder %v186_v22, %v4882_v9  ;;  %vm223_vm7 = vcmp.lt.s32.totalorder %v186_v22, %v213_v15  ;;  %vm4920_vm3 = vmand %vm202_vm15, %vm220_vm0 }
  0x23   : > { %6182 = vst [vmem:[#allocation15_spill] sm:$0xff] %v6181_v29  ;;  %v6183_v31 = vmov 0  ;;  %v191_v32 = vadd.s32 1792, %v177_v8  ;;  %vm206_vm9 = vcmp.ge.s32.totalorder %v187_v24, %v4882_v9  ;;  %vm224_vm10 = vcmp.lt.s32.totalorder %v187_v24, %v213_v15  ;;  %vm4925_vm8 = vmand %vm203_vm1, %vm221_vm4 }
  0x24   : > { %v6184_v31 = vsel %vm4920_vm3, 4294967295, %v6183_v31  ;;  %v6186_v33 = vmov 0  ;;  %v192_v34 = vadd.s32 1920, %v177_v8  ;;  %vm207_vm12 = vcmp.ge.s32.totalorder %v188_v26, %v4882_v9  ;;  %vm4930_vm14 = vmand %vm204_vm2, %vm222_vm5 }
  0x25   : > { %6185 = vst [vmem:[#allocation16_spill] sm:$0xff] %v6184_v31  ;;  %v6187_v33 = vsel %vm4925_vm8, 4294967295, %v6186_v33  ;;  %vm225_vm13 = vcmp.lt.s32.totalorder %v188_v26, %v213_v15  ;;  %v6189_v35 = vmov 0  ;;  %vm208_vm15 = vcmp.ge.s32.totalorder %v189_v28, %v4882_v9  ;;  %vm4935_vm3 = vmand %vm205_vm6, %vm223_vm7 }
  0x26   : > { %6188 = vst [vmem:[#allocation17_spill] sm:$0xff] %v6187_v33  ;;  %v6190_v35 = vsel %vm4930_vm14, 4294967295, %v6189_v35  ;;  %vm226_vm0 = vcmp.lt.s32.totalorder %v189_v28, %v213_v15  ;;  %v6191_v36 = vmov 0  ;;  %vm209_vm1 = vcmp.ge.s32.totalorder %v190_v30, %v4882_v9  ;;  %vm4940_vm8 = vmand %vm206_vm9, %vm224_vm10 }
  0x27   : > { %v6192_v36 = vsel %vm4935_vm3, 4294967295, %v6191_v36  ;;  %vm227_vm4 = vcmp.lt.s32.totalorder %v190_v30, %v213_v15  ;;  %vm210_vm2 = vcmp.ge.s32.totalorder %v191_v32, %v4882_v9  ;;  %vm228_vm5 = vcmp.lt.s32.totalorder %v191_v32, %v213_v15  ;;  %vm4945_vm11 = vmand %vm207_vm12, %vm225_vm13 }
  0x28   : > { %6193 = vst [vmem:[#allocation18_spill] sm:$0xff] %v6192_v36  ;;  %vm211_vm14 = vcmp.ge.s32.totalorder %v192_v34, %v4882_v9  ;;  %vm229_vm6 = vcmp.lt.s32.totalorder %v192_v34, %v213_v15  ;;  %vm4950_vm7 = vmand %vm208_vm15, %vm226_vm0  ;;  %v6198_v39 = vmov 0  ;;  %v6203_v41 = vmov 0 }
  0x29   : > { %v6199_v39 = vsel %vm4950_vm7, 4294967295, %v6198_v39  ;;  %vm4954_vm3 = vmand %vm209_vm1, %vm227_vm4  ;;  %v6206_v42 = vmov 0 }
  0x2a   : > { %6200 = vst [vmem:[#allocation19_spill] sm:$0xff] %v6199_v39  ;;  %vm4958_vm9 = vmand %vm210_vm2, %vm228_vm5 }
  0x2b   : > { %v6204_v41 = vsel %vm4958_vm9, 4294967295, %v6203_v41  ;;  %vm4962_vm10 = vmand %vm211_vm14, %vm229_vm6 }
  0x2c   : > { %6205 = vst [vmem:[#allocation20_spill] sm:$0xff] %v6204_v41  ;;  %v6207_v42 = vsel %vm4962_vm10, 4294967295, %v6206_v42 }
  0x2d   : > { %6208 = vst [vmem:[#allocation21_spill] sm:$0xff] %v6207_v42 }
  0x2e LB: >> { %v6209_v5 = vld [vmem:[#allocation9_spill] sm:$0xff]  ;;  %vm1580_vm12 = vcmask 1041408   ;;  %v6210_v4 = vld [vmem:[#allocation8_spill] sm:$0xff]  ;;  %v6211_v3 = vld [vmem:[#allocation7_spill] sm:$0xff]  ;;  %s3838_s28 = sshll.u32 %s4767_s27, 10  ;;  %vm1195_vm14 = vcmask 293888   ;;  %s4767_s27 = sphi %s4967_s27, %s273_s27  }
  0x2f   : >> { %v3686_v43 = vcombine.low %v6209_v5, %v6209_v5  ;;  %v3685_v44 = vcombine.low %v6211_v3, %v6210_v4  ;;  %s4978_s29 = scalar_lea.vmem %s4880_s26, %s3838_s28  ;;  %v6212_v1 = vld [vmem:[#allocation6_spill] sm:$0xff]  ;;  %v6213_v0 = vld [vmem:[#allocation5_spill] sm:$0xff]  ;;  %v6214_v21 = vld [vmem:[#allocation11_spill] sm:$0xff]  ;;  %s3552_s4 = sshll.u32 %s4767_s27, 3 }
  0x30   : >> { %v3684_v46 = vcombine.low %v6213_v0, %v6212_v1  ;;  %v4571_v47 = vld [vmem:[%s4978_s29] sm:$0xff]   ;;  %v4572_v48 = vld [vmem:[%s4978_s29 + $0x8] sm:$0xff]   ;;  %v4573_v49 = vld [vmem:[%s4978_s29 + $0x10] sm:$0xff]   ;;  %vm6215_vm13 = vnez %v6214_v21  ;;  %s3457_s5 = scalar_lea.vmem %s166_s25, %s3552_s4 [#allocation2]  ;;  %s273_s27 = sadd.s32 1, %s4767_s27  }
  0x31   : >> { %4519 = vmatprep.subr.msk.bf16.mxu0 %vm1580_vm12, %v3686_v43  ;;  %v1582_v45 = vsel %vm1580_vm12, %v3686_v43, 0  ;;  %4520 = vmatprep.subr.msk.bf16.mxu1 %vm1580_vm12, %v3686_v43  ;;  %v4574_v50 = vld [vmem:[%s4978_s29 + $0x18] sm:$0xff]   ;;  %v4575_v51 = vld [vmem:[%s4978_s29 + $0x20] sm:$0xff]   ;;  %v4576_v52 = vld [vmem:[%s4978_s29 + $0x28] sm:$0xff]   ;;  %p270_p11 = scmp.ge.s32.totalorder %s273_s27, 2  }
  0x32   : >> { %4252 = vmatpush3.bf16.msra.mxu0 %v1582_v45  ;;  %4516 = vmatpush3.bf16.msra.mxu1 %v1582_v45  ;;  %v4577_v53 = vld [vmem:[%s4978_s29 + $0x30] sm:$0xff]   ;;  %v4578_v54 = vld [vmem:[%s4978_s29 + $0x38] sm:$0xff]   ;;  %v4579_v55 = vld [vmem:[%s4978_s29 + $0x40] sm:$0xff]   ;;  %s3839_s6 = sshll.u32 (%p270_p11), %s4814_s16, 8  ;;  %s3473_s10 = sshll.u32 (%p270_p11), %s166_s25, 4  ;;  %s6096_s10 = int_to_ptr.vmem [resolvable:$true] %s3473_s10 }
  0x33   : >> { %4253 = vmatprep.subr.bf16.mxu0 %v3685_v44  ;;  %4514 = vmatprep.subr.bf16.mxu1 %v3685_v44  ;;  %v4580_v56 = vld [vmem:[%s4978_s29 + $0x48] sm:$0xff]   ;;  %v4581_v57 = vld [vmem:[%s4978_s29 + $0x50] sm:$0xff]   ;;  %v4582_v58 = vld [vmem:[%s4978_s29 + $0x58] sm:$0xff]   ;;  %s6092_s9 = scalar_lea.hbm (%p270_p11), %s6143_s3, %s3839_s6  ;;  %s6100_s11 = scalar_lea.sflag (%p270_p11), [#allocation3], %s164_s24 }
  0x34   : >> { %4257 = vmatprep.mubr.msk.bf16.mxu0 %vm1195_vm14, %v4571_v47  ;;  %v4583_v59 = vld [vmem:[%s4978_s29 + $0x60] sm:$0xff]   ;;  %v4584_v60 = vld [vmem:[%s4978_s29 + $0x68] sm:$0xff]   ;;  %v4585_v61 = vld [vmem:[%s4978_s29 + $0x70] sm:$0xff]   ;;  %s4699_s17 = scalar_lea.vmem (%p270_p11), %s6096_s10, 256  ;;  %s4770_s16 = smov (%p270_p11), [#allocation2]  }
  0x35   : >> { %v4586_v62 = vld [vmem:[%s4978_s29 + $0x78] sm:$0xff]   ;;  %v4587_v63 = vld [vmem:[%s4978_s29 + $0x80] sm:$0xff]   ;;  %v4619_v2 = vld [vmem:[%s4978_s29 + $0x2f0] sm:$0xff]   ;;  %p4700_p12 = scmp.ne.s32.totalorder (%p270_p11), %s6096_s10, %s4699_s17  ;;  %s4703_s19 = sshll.u32 (%p270_p11), %s4770_s16, 4  ;;  %s4704_s19 = int_to_ptr.vmem [resolvable:$false] %s4703_s19 }
  0x36   : >> { %4254 = vmatpush3.bf16.msra.mxu0 %v3685_v44  ;;  %4517 = vmatpush3.bf16.msra.mxu1 %v3685_v44  ;;  %v4620_v7 = vld [vmem:[%s4978_s29 + $0x2f8] sm:$0xff]   ;;  %v4588_v8 = vld [vmem:[%s4978_s29 + $0x88] sm:$0xff]   ;;  %v4589_v9 = vld [vmem:[%s4978_s29 + $0x90] sm:$0xff]   ;;  %s4705_s20 = scalar_lea.vmem (%p270_p11), %s4704_s19, 512  ;;  %p4706_p1 = scmp.lt.s32.totalorder (%p270_p11), %s6096_s10, %s4704_s19 }
  0x37   : >> { %4255 = vmatprep.subr.bf16.mxu0 %v3684_v46  ;;  %4515 = vmatprep.subr.bf16.mxu1 %v3684_v46  ;;  %v4623_v10 = vld [vmem:[%s4978_s29 + $0x300] sm:$0xff]   ;;  %v4624_v11 = vld [vmem:[%s4978_s29 + $0x308] sm:$0xff]   ;;  %v4590_v12 = vld [vmem:[%s4978_s29 + $0x98] sm:$0xff]   ;;  %p4701_p13 = pnand (%p270_p11), %p4700_p12, %p4831_p5  ;;  %p4707_p2 = scmp.lt.s32.totalorder (%p270_p11), %s4705_s20, %s4699_s17 }
  0x38   : >> { %4445 = vmatprep.mubr.msk.bf16.mxu1 %vm1195_vm14, %v4619_v2  ;;  %v4591_v13 = vld [vmem:[%s4978_s29 + $0xa0] sm:$0xff]   ;;  %v4627_v14 = vld [vmem:[%s4978_s29 + $0x310] sm:$0xff]   ;;  %v4628_v15 = vld [vmem:[%s4978_s29 + $0x318] sm:$0xff]  }
  0x39   : >> { %v4592_v16 = vld [vmem:[%s4978_s29 + $0xa8] sm:$0xff]   ;;  %v4593_v17 = vld [vmem:[%s4978_s29 + $0xb0] sm:$0xff]   ;;  %v4631_v18 = vld [vmem:[%s4978_s29 + $0x320] sm:$0xff]   ;;  %p4702_p0 = pneg (%p270_p11), %p4701_p13  ;;  %p4708_p3 = por (%p270_p11), %p4707_p2, %p4706_p1 }
  0x3a   : >> { %4256 = vmatpush3.bf16.msra.mxu0 %v3684_v46  ;;  %4518 = vmatpush3.bf16.msra.mxu1 %v3684_v46  ;;  %v4632_v20 = vld [vmem:[%s4978_s29 + $0x328] sm:$0xff]   ;;  %v4594_v22 = vld [vmem:[%s4978_s29 + $0xb8] sm:$0xff]   ;;  %v4595_v24 = vld [vmem:[%s4978_s29 + $0xc0] sm:$0xff]  }
  0x3b   : >> { %v4635_v26 = vld [vmem:[%s4978_s29 + $0x330] sm:$0xff]   ;;  %v4636_v28 = vld [vmem:[%s4978_s29 + $0x338] sm:$0xff]   ;;  %v4596_v30 = vld [vmem:[%s4978_s29 + $0xc8] sm:$0xff]   ;;  %p4709_p4 = pnand (%p270_p11), %p4708_p3, %p4702_p0 }
  0x3c   : >> { %v4597_v32 = vld [vmem:[%s4978_s29 + $0xd0] sm:$0xff]   ;;  %v4639_v34 = vld [vmem:[%s4978_s29 + $0x340] sm:$0xff]   ;;  %v4640_v43 = vld [vmem:[%s4978_s29 + $0x348] sm:$0xff]  }
  0x3d   : >> { %4258 = vmatmul.mubr.msk.bf16.vlgmr.msra.gmra.mxu0 %vm1195_vm14, %v4572_v48  ;;  %4446 = vmatmul.mubr.msk.bf16.vlgmr.msra.gmra.mxu1 %vm1195_vm14, %v4620_v7  ;;  %v4598_v44 = vld [vmem:[%s4978_s29 + $0xd8] sm:$0xff]   ;;  %v4599_v45 = vld [vmem:[%s4978_s29 + $0xe0] sm:$0xff]   ;;  %v4643_v46 = vld [vmem:[%s4978_s29 + $0x350] sm:$0xff]  }
  0x3e   : >> { %4261 = vmatprep.mubr.msk.bf16.mxu0 %vm1195_vm14, %v4573_v49  ;;  %4449 = vmatprep.mubr.msk.bf16.mxu1 %vm1195_vm14, %v4623_v10  ;;  %v4644_v47 = vld [vmem:[%s4978_s29 + $0x358] sm:$0xff]   ;;  %v4600_v48 = vld [vmem:[%s4978_s29 + $0xe8] sm:$0xff]   ;;  %v4601_v49 = vld [vmem:[%s4978_s29 + $0xf0] sm:$0xff]  }
  0x3f   : >> { %v4608_v2 = vld [vmem:[%s4978_s29 + $0x128] sm:$0xff]   ;;  %v4609_v7 = vld [vmem:[%s4978_s29 + $0x130] sm:$0xff]   ;;  %v4610_v10 = vld [vmem:[%s4978_s29 + $0x138] sm:$0xff]  }
  0x40   : >> { %v6217_v19 = vld [vmem:[#allocation10_spill] sm:$0xff]  ;;  %v6219_v25 = vld [vmem:[#allocation13_spill] sm:$0xff]  ;;  %v6221_v23 = vld [vmem:[#allocation12_spill] sm:$0xff] }
  0x41   : >> { %vm6218_vm15 = vnez %v6217_v19  ;;  %vm6220_vm0 = vnez %v6219_v25  ;;  %vm6222_vm1 = vnez %v6221_v23  ;;  %v6223_v29 = vld [vmem:[#allocation15_spill] sm:$0xff]  ;;  %v6236_v27 = vld [vmem:[#allocation14_spill] sm:$0xff]  ;;  %v6238_v33 = vld [vmem:[#allocation17_spill] sm:$0xff] }
  0x42   : >> { %vm6224_vm4 = vnez %v6223_v29  ;;  %vm6237_vm2 = vnez %v6236_v27  ;;  %vm6239_vm5 = vnez %v6238_v33  ;;  %v6251_v31 = vld [vmem:[#allocation16_spill] sm:$0xff]  ;;  %v6253_v36 = vld [vmem:[#allocation18_spill] sm:$0xff] }
  0x43   : >> { %vm6252_vm6 = vnez %v6251_v31  ;;  %vm6254_vm12 = vnez %v6253_v36 }
  0x45   : >> { %4262 = vmatmul.mubr.msk.bf16.gmra.mxu0 %vm1195_vm14, %v4574_v50  ;;  %4450 = vmatmul.mubr.msk.bf16.gmra.mxu1 %vm1195_vm14, %v4624_v11  ;;  %v4647_v50 = vld [vmem:[%s4978_s29 + $0x360] sm:$0xff]  }
  0x46   : >> { %4265 = vmatprep.mubr.msk.bf16.mxu0 %vm1195_vm14, %v4575_v51  ;;  %4453 = vmatprep.mubr.msk.bf16.mxu1 %vm1195_vm14, %v4627_v14  ;;  %v4648_v51 = vld [vmem:[%s4978_s29 + $0x368] sm:$0xff]   ;;  %v4611_v11 = vld [vmem:[%s4978_s29 + $0x140] sm:$0xff]  }
  0x47   : >> { %v4612_v14 = vld [vmem:[%s4978_s29 + $0x148] sm:$0xff]  }
  0x4d   : >> { %4266 = vmatmul.mubr.msk.bf16.gmra.mxu0 %vm1195_vm14, %v4576_v52  ;;  %4454 = vmatmul.mubr.msk.bf16.gmra.mxu1 %vm1195_vm14, %v4628_v15  ;;  %v4602_v52 = vld [vmem:[%s4978_s29 + $0xf8] sm:$0xff]   ;;  %v4613_v15 = vld [vmem:[%s4978_s29 + $0x150] sm:$0xff]  }
  0x4e   : >> { %4269 = vmatprep.mubr.msk.bf16.mxu0 %vm1195_vm14, %v4577_v53  ;;  %4457 = vmatprep.mubr.msk.bf16.mxu1 %vm1195_vm14, %v4631_v18  ;;  %v4603_v53 = vld [vmem:[%s4978_s29 + $0x100] sm:$0xff]   ;;  %v4614_v18 = vld [vmem:[%s4978_s29 + $0x158] sm:$0xff]  }
  0x55   : >> { %4270 = vmatmul.mubr.msk.bf16.gmra.mxu0 %vm1195_vm14, %v4578_v54  ;;  %4458 = vmatmul.mubr.msk.bf16.gmra.mxu1 %vm1195_vm14, %v4632_v20  ;;  %v4651_v54 = vld [vmem:[%s4978_s29 + $0x370] sm:$0xff]   ;;  %v4615_v20 = vld [vmem:[%s4978_s29 + $0x160] sm:$0xff]  }
  0x56   : >> { %4273 = vmatprep.mubr.msk.bf16.mxu0 %vm1195_vm14, %v4579_v55  ;;  %4461 = vmatprep.mubr.msk.bf16.mxu1 %vm1195_vm14, %v4635_v26  ;;  %v4652_v55 = vld [vmem:[%s4978_s29 + $0x378] sm:$0xff]   ;;  %v4616_v26 = vld [vmem:[%s4978_s29 + $0x168] sm:$0xff]  }
  0x5d   : >> { %4274 = vmatmul.mubr.msk.bf16.gmra.mxu0 %vm1195_vm14, %v4580_v56  ;;  %4462 = vmatmul.mubr.msk.bf16.gmra.mxu1 %vm1195_vm14, %v4636_v28  ;;  %v4604_v56 = vld [vmem:[%s4978_s29 + $0x108] sm:$0xff]   ;;  %v4617_v28 = vld [vmem:[%s4978_s29 + $0x170] sm:$0xff]  }
  0x5e   : >> { %4277 = vmatprep.mubr.msk.bf16.mxu0 %vm1195_vm14, %v4581_v57  ;;  %4465 = vmatprep.mubr.msk.bf16.mxu1 %vm1195_vm14, %v4639_v34  ;;  %v4605_v57 = vld [vmem:[%s4978_s29 + $0x110] sm:$0xff]   ;;  %v4618_v34 = vld [vmem:[%s4978_s29 + $0x178] sm:$0xff]  }
  0x65   : >> { %4278 = vmatmul.mubr.msk.bf16.gmra.mxu0 %vm1195_vm14, %v4582_v58  ;;  %4466 = vmatmul.mubr.msk.bf16.gmra.mxu1 %vm1195_vm14, %v4640_v43  ;;  %v4655_v58 = vld [vmem:[%s4978_s29 + $0x380] sm:$0xff]  }
  0x66   : >> { %4281 = vmatprep.mubr.msk.bf16.mxu0 %vm1195_vm14, %v4583_v59  ;;  %4469 = vmatprep.mubr.msk.bf16.mxu1 %vm1195_vm14, %v4643_v46  ;;  %v4656_v59 = vld [vmem:[%s4978_s29 + $0x388] sm:$0xff]   ;;  %v4621_v43 = vld [vmem:[%s4978_s29 + $0x180] sm:$0xff]  }
  0x67   : >> { %v4622_v46 = vld [vmem:[%s4978_s29 + $0x188] sm:$0xff]  }
  0x6d   : >> { %4282 = vmatmul.mubr.msk.bf16.gmra.mxu0 %vm1195_vm14, %v4584_v60  ;;  %4470 = vmatmul.mubr.msk.bf16.gmra.mxu1 %vm1195_vm14, %v4644_v47  ;;  %v4606_v60 = vld [vmem:[%s4978_s29 + $0x118] sm:$0xff]   ;;  %v4625_v47 = vld [vmem:[%s4978_s29 + $0x190] sm:$0xff]  }
  0x6e   : >> { %4285 = vmatprep.mubr.msk.bf16.mxu0 %vm1195_vm14, %v4585_v61  ;;  %4473 = vmatprep.mubr.msk.bf16.mxu1 %vm1195_vm14, %v4647_v50  ;;  %v4607_v61 = vld [vmem:[%s4978_s29 + $0x120] sm:$0xff]  }
  0x75   : >> { %4286 = vmatmul.mubr.msk.bf16.gmra.mxu0 %vm1195_vm14, %v4586_v62  ;;  %4474 = vmatmul.mubr.msk.bf16.gmra.mxu1 %vm1195_vm14, %v4648_v51  ;;  %v4659_v62 = vld [vmem:[%s4978_s29 + $0x390] sm:$0xff]  }
  0x76   : >> { %4289 = vmatprep.mubr.msk.bf16.mxu0 %vm1195_vm14, %v4587_v63  ;;  %4477 = vmatprep.mubr.msk.bf16.mxu1 %vm1195_vm14, %v4651_v54  ;;  %v4660_v63 = vld [vmem:[%s4978_s29 + $0x398] sm:$0xff]  }
  0x7d   : >> { %4290 = vmatmul.mubr.msk.bf16.gmra.mxu0 %vm1195_vm14, %v4588_v8  ;;  %4478 = vmatmul.mubr.msk.bf16.gmra.mxu1 %vm1195_vm14, %v4652_v55  ;;  %v4663_v8 = vld [vmem:[%s4978_s29 + $0x3a0] sm:$0xff]  }
  0x7e   : >> { %4293 = vmatprep.mubr.msk.bf16.mxu0 %vm1195_vm14, %v4589_v9  ;;  %4481 = vmatprep.mubr.msk.bf16.mxu1 %vm1195_vm14, %v4655_v58  ;;  %v4664_v9 = vld [vmem:[%s4978_s29 + $0x3a8] sm:$0xff]  }
  0x7f   : >> { %v4630_v58 = vld [vmem:[%s4978_s29 + $0x1a8] sm:$0xff]  }
  0x85   : >> { %4294 = vmatmul.mubr.msk.bf16.gmra.mxu0 %vm1195_vm14, %v4590_v12  ;;  %4482 = vmatmul.mubr.msk.bf16.gmra.mxu1 %vm1195_vm14, %v4656_v59  ;;  %v4667_v12 = vld [vmem:[%s4978_s29 + $0x3b0] sm:$0xff]  }
  0x86   : >> { %4297 = vmatprep.mubr.msk.bf16.mxu0 %vm1195_vm14, %v4591_v13  ;;  %4485 = vmatprep.mubr.msk.bf16.mxu1 %vm1195_vm14, %v4659_v62  ;;  %v4668_v13 = vld [vmem:[%s4978_s29 + $0x3b8] sm:$0xff]   ;;  %v4633_v59 = vld [vmem:[%s4978_s29 + $0x1b0] sm:$0xff]  }
  0x8d   : >> { %4298 = vmatmul.mubr.msk.bf16.gmra.mxu0 %vm1195_vm14, %v4592_v16  ;;  %4486 = vmatmul.mubr.msk.bf16.gmra.mxu1 %vm1195_vm14, %v4660_v63  ;;  %v4671_v16 = vld [vmem:[%s4978_s29 + $0x3c0] sm:$0xff]  }
  0x8e   : >> { %4301 = vmatprep.mubr.msk.bf16.mxu0 %vm1195_vm14, %v4593_v17  ;;  %4489 = vmatprep.mubr.msk.bf16.mxu1 %vm1195_vm14, %v4663_v8  ;;  %v4672_v17 = vld [vmem:[%s4978_s29 + $0x3c8] sm:$0xff]  }
  0x95   : >> { %4302 = vmatmul.mubr.msk.bf16.gmra.mxu0 %vm1195_vm14, %v4594_v22  ;;  %4490 = vmatmul.mubr.msk.bf16.gmra.mxu1 %vm1195_vm14, %v4664_v9  ;;  %v4675_v22 = vld [vmem:[%s4978_s29 + $0x3d0] sm:$0xff]  }
  0x96   : >> { %4305 = vmatprep.mubr.msk.bf16.mxu0 %vm1195_vm14, %v4595_v24  ;;  %4493 = vmatprep.mubr.msk.bf16.mxu1 %vm1195_vm14, %v4667_v12  ;;  %v4676_v24 = vld [vmem:[%s4978_s29 + $0x3d8] sm:$0xff]   ;;  %v4638_v12 = vld [vmem:[%s4978_s29 + $0x1c8] sm:$0xff]  }
  0x9d   : >> { %4306 = vmatmul.mubr.msk.bf16.gmra.mxu0 %vm1195_vm14, %v4596_v30  ;;  %4494 = vmatmul.mubr.msk.bf16.gmra.mxu1 %vm1195_vm14, %v4668_v13  ;;  %v4679_v30 = vld [vmem:[%s4978_s29 + $0x3e0] sm:$0xff]   ;;  %v4641_v13 = vld [vmem:[%s4978_s29 + $0x1d0] sm:$0xff]  }
  0x9e   : >> { %4309 = vmatprep.mubr.msk.bf16.mxu0 %vm1195_vm14, %v4597_v32  ;;  %4497 = vmatprep.mubr.msk.bf16.mxu1 %vm1195_vm14, %v4671_v16  ;;  %v4680_v32 = vld [vmem:[%s4978_s29 + $0x3e8] sm:$0xff]  }
  0xa5   : >> { %4310 = vmatmul.mubr.msk.bf16.gmra.mxu0 %vm1195_vm14, %v4598_v44  ;;  %4498 = vmatmul.mubr.msk.bf16.gmra.mxu1 %vm1195_vm14, %v4672_v17  ;;  %v4683_v44 = vld [vmem:[%s4978_s29 + $0x3f0] sm:$0xff]  }
  0xa6   : >> { %4313 = vmatprep.mubr.msk.bf16.mxu0 %vm1195_vm14, %v4599_v45  ;;  %4501 = vmatprep.mubr.msk.bf16.mxu1 %vm1195_vm14, %v4675_v22  ;;  %v4684_v45 = vld [vmem:[%s4978_s29 + $0x3f8] sm:$0xff]  }
  0xad   : >> { %4314 = vmatmul.mubr.msk.bf16.gmra.mxu0 %vm1195_vm14, %v4600_v48  ;;  %4502 = vmatmul.mubr.msk.bf16.gmra.mxu1 %vm1195_vm14, %v4676_v24 }
  0xae   : >> { %4317 = vmatprep.mubr.msk.bf16.mxu0 %vm1195_vm14, %v4601_v49  ;;  %4505 = vmatprep.mubr.msk.bf16.mxu1 %vm1195_vm14, %v4679_v30  ;;  %v6144_v49 = vmov 0.00390625   ;;  %v4646_v30 = vld [vmem:[%s4978_s29 + $0x1e8] sm:$0xff]  }
  0xb5   : >> { %4318 = vmatmul.mubr.msk.bf16.gmra.mxu0 %vm1195_vm14, %v4602_v52  ;;  %4506 = vmatmul.mubr.msk.bf16.gmra.mxu1 %vm1195_vm14, %v4680_v32  ;;  %v4626_v52 = vld [vmem:[%s4978_s29 + $0x198] sm:$0xff]   ;;  %v4649_v32 = vld [vmem:[%s4978_s29 + $0x1f0] sm:$0xff]  }
  0xb6   : >> { %4321 = vmatprep.mubr.msk.bf16.mxu0 %vm1195_vm14, %v4603_v53  ;;  %4509 = vmatprep.mubr.msk.bf16.mxu1 %vm1195_vm14, %v4683_v44  ;;  %v4629_v53 = vld [vmem:[%s4978_s29 + $0x1a0] sm:$0xff]  }
  0xbd   : >> { %4322 = vmatmul.mubr.msk.bf16.gmra.mxu0 %vm1195_vm14, %v4604_v56  ;;  %4510 = vmatmul.mubr.msk.bf16.gmra.mxu1 %vm1195_vm14, %v4684_v45 }
  0xbe   : >> { %4325 = vmatprep.mubr.msk.bf16.mxu0 %vm1195_vm14, %v4605_v57  ;;  %3815 = vmatprep.mubr.msk.f32.mxu1 %vm6215_vm13, %v6144_v49 }
  0xc5   : >> { %4326 = vmatmul.mubr.msk.bf16.gmra.mxu0 %vm1195_vm14, %v4606_v60 }
  0xc6   : >> { %4329 = vmatprep.mubr.msk.bf16.mxu0 %vm1195_vm14, %v4607_v61 }
  0xcd   : >> { %4330 = vmatmul.mubr.msk.bf16.gmra.mxu0 %vm1195_vm14, %v4608_v2  ;;  %v4634_v2 = vld [vmem:[%s4978_s29 + $0x1b8] sm:$0xff]  }
  0xce   : >> { %4333 = vmatprep.mubr.msk.bf16.mxu0 %vm1195_vm14, %v4609_v7  ;;  %v4637_v7 = vld [vmem:[%s4978_s29 + $0x1c0] sm:$0xff]  }
  0xd5   : >> { %4334 = vmatmul.mubr.msk.bf16.gmra.mxu0 %vm1195_vm14, %v4610_v10 }
  0xd6   : >> { %4337 = vmatprep.mubr.msk.bf16.mxu0 %vm1195_vm14, %v4611_v11 }
  0xdd   : >> { %4338 = vmatmul.mubr.msk.bf16.gmra.mxu0 %vm1195_vm14, %v4612_v14 }
  0xde   : >> { %4341 = vmatprep.mubr.msk.bf16.mxu0 %vm1195_vm14, %v4613_v15 }
  0xe5   : >> { %4342 = vmatmul.mubr.msk.bf16.gmra.mxu0 %vm1195_vm14, %v4614_v18  ;;  %v4642_v18 = vld [vmem:[%s4978_s29 + $0x1d8] sm:$0xff]  }
  0xe6   : >> { %4345 = vmatprep.mubr.msk.bf16.mxu0 %vm1195_vm14, %v4615_v20  ;;  %v4645_v20 = vld [vmem:[%s4978_s29 + $0x1e0] sm:$0xff]  }
  0xed   : >> { %4346 = vmatmul.mubr.msk.bf16.gmra.mxu0 %vm1195_vm14, %v4616_v26 }
  0xee   : >> { %4349 = vmatprep.mubr.msk.bf16.mxu0 %vm1195_vm14, %v4617_v28 }
  0xf5   : >> { %4350 = vmatmul.mubr.msk.bf16.gmra.mxu0 %vm1195_vm14, %v4618_v34 }
  0xf6   : >> { %4353 = vmatprep.mubr.msk.bf16.mxu0 %vm1195_vm14, %v4621_v43 }
  0xfd   : >> { %v5150_v48 = vpop.f32.mrf.mxu0  ;;  %4354 = vmatmul.mubr.msk.bf16.gmra.mxu0 %vm1195_vm14, %v4622_v46  ;;  %v4650_v46 = vld [vmem:[%s4978_s29 + $0x1f8] sm:$0xff]  }
  0xfe   : >> { %4357 = vmatprep.mubr.msk.bf16.mxu0 %vm1195_vm14, %v4625_v47  ;;  %v4653_v47 = vld [vmem:[%s4978_s29 + $0x200] sm:$0xff]  }
  0xff   : >> { %v5157_v50 = vpop.f32.mrf.mxu0 }
 0x101   : >> { %v5159_v51 = vpop.f32.mrf.mxu0 }
 0x103   : >> { %v5163_v54 = vpop.f32.mrf.mxu0 }
 0x105   : >> { %v5165_v55 = vpop.f32.mrf.mxu0  ;;  %4358 = vmatmul.mubr.msk.bf16.gmra.mxu0 %vm1195_vm14, %v4626_v52 }
 0x106   : >> { %4361 = vmatprep.mubr.msk.bf16.mxu0 %vm1195_vm14, %v4629_v53 }
 0x107   : >> { %v5169_v56 = vpop.f32.mrf.mxu0 }
 0x109   : >> { %v5171_v57 = vpop.f32.mrf.mxu0 }
 0x10b   : >> { %v5175_v60 = vpop.f32.mrf.mxu0 }
 0x10d   : >> { %v5177_v61 = vpop.f32.mrf.mxu0  ;;  %4362 = vmatmul.mubr.msk.bf16.gmra.mxu0 %vm1195_vm14, %v4630_v58 }
 0x10e   : >> { %4365 = vmatprep.mubr.msk.bf16.mxu0 %vm1195_vm14, %v4633_v59 }
 0x10f   : >> { %v5181_v62 = vpop.f32.mrf.mxu0 }
 0x111   : >> { %v5183_v63 = vpop.f32.mrf.mxu0 }
 0x113   : >> { %v5187_v8 = vpop.f32.mrf.mxu0 }
 0x115   : >> { %v4271_v9 = vpop.f32.mrf.mxu0  ;;  %4366 = vmatmul.mubr.msk.bf16.gmra.mxu0 %vm1195_vm14, %v4634_v2 }
 0x116   : >> { %4369 = vmatprep.mubr.msk.bf16.mxu0 %vm1195_vm14, %v4637_v7  ;;  %v4654_v7 = vld [vmem:[%s4978_s29 + $0x208] sm:$0xff]  }
 0x117   : >> { %v1666_v10 = vpop.f32.mrf.mxu0 }
 0x119   : >> { %v4272_v11 = vpop.f32.mrf.mxu0 }
 0x11a   : >> { %v1678_v59 = vadd.f32 %v4272_v11, %v4875_v6 }
 0x11b   : >> { %v1669_v14 = vpop.f32.mrf.mxu0 }
 0x11c   : >> { %v2656_v0 = vmax.f32 %v1678_v59, 0.0 }
 0x11d   : >> { %v5193_v15 = vpop.f32.mrf.mxu0  ;;  %4370 = vmatmul.mubr.msk.bf16.gmra.mxu0 %vm1195_vm14, %v4638_v12 }
 0x11e   : >> { %4373 = vmatprep.mubr.msk.bf16.mxu0 %vm1195_vm14, %v4641_v13 }
 0x11f   : >> { %v5197_v16 = vpop.f32.mrf.mxu0 }
 0x121   : >> { %v5199_v17 = vpop.f32.mrf.mxu0 }
 0x123   : >> { %v5203_v22 = vpop.f32.mrf.mxu0 }
 0x125   : >> { %v5205_v24 = vpop.f32.mrf.mxu0  ;;  %4374 = vmatmul.mubr.msk.bf16.gmra.mxu0 %vm1195_vm14, %v4642_v18  ;;  %v4657_v18 = vld [vmem:[%s4978_s29 + $0x210] sm:$0xff]  }
 0x126   : >> { %4377 = vmatprep.mubr.msk.bf16.mxu0 %vm1195_vm14, %v4645_v20  ;;  %v1675_v20 = vadd.f32 %v4271_v9, %v4875_v6 }
 0x127   : >> { %v5209_v26 = vpop.f32.mrf.mxu0 }
 0x128   : >> { %v2655_v9 = vmax.f32 %v1675_v20, 0.0 }
 0x129   : >> { %v5211_v28 = vpop.f32.mrf.mxu0 }
 0x12b   : >> { %v5215_v34 = vpop.f32.mrf.mxu0 }
 0x12d   : >> { %v4283_v43 = vpop.f32.mrf.mxu0  ;;  %4378 = vmatmul.mubr.msk.bf16.gmra.mxu0 %vm1195_vm14, %v4646_v30 }
 0x12e   : >> { %4381 = vmatprep.mubr.msk.bf16.mxu0 %vm1195_vm14, %v4649_v32 }
 0x12f   : >> { %v1714_v44 = vpop.f32.mrf.mxu0 }
 0x131   : >> { %v4284_v45 = vpop.f32.mrf.mxu0 }
 0x133   : >> { %v1717_v52 = vpop.f32.mrf.mxu0 }
 0x135   : >> { %v4287_v53 = vpop.f32.mrf.mxu0  ;;  %4382 = vmatmul.mubr.msk.bf16.gmra.mxu0 %vm1195_vm14, %v4650_v46  ;;  %v1670_v46 = vadd.f32 %v4875_v6, %v1669_v14  ;;  %v1726_v14 = vadd.f32 %v4284_v45, %v4875_v6 }
 0x136   : >> { %4385 = vmatprep.mubr.msk.bf16.mxu0 %vm1195_vm14, %v4653_v47  ;;  %v1739_v12 = vadd.f32 %v4287_v53, %v4875_v6 }
 0x137   : >> { %v1730_v58 = vpop.f32.mrf.mxu0 }
 0x138   : >> { %v2671_v11 = vmax.f32 %v1739_v12, 0.0  ;;  %v1731_v53 = vadd.f32 %v4875_v6, %v1730_v58  ;;  %v2654_v12 = vmax.f32 %v1670_v46, 0.0  ;;  %v4658_v58 = vld [vmem:[%s4978_s29 + $0x218] sm:$0xff]  }
 0x139   : >> { %v4288_v2 = vpop.f32.mrf.mxu0 }
 0x13a   : >> { %v1742_v13 = vadd.f32 %v4288_v2, %v4875_v6  ;;  %v1667_v2 = vadd.f32 %v4875_v6, %v1666_v10  ;;  %v2669_v20 = vmax.f32 %v1731_v53, 0.0  ;;  %v4661_v10 = vld [vmem:[%s4978_s29 + $0x220] sm:$0xff]  }
 0x13b   : >> { %v1733_v30 = vpop.f32.mrf.mxu0 }
 0x13c   : >> { %v2672_v32 = vmax.f32 %v1742_v13, 0.0  ;;  %v1734_v49 = vadd.f32 %v4875_v6, %v1733_v30 }
 0x13d   : >> { %v5231_v47 = vpop.f32.mrf.mxu0  ;;  %4386 = vmatmul.mubr.msk.bf16.gmra.mxu0 %vm1195_vm14, %v4654_v7  ;;  %v1662_v7 = vadd.f32 %v5183_v63, %v4875_v6  ;;  %v1718_v63 = vadd.f32 %v4875_v6, %v1717_v52  ;;  %v1651_v52 = vadd.f32 %v4875_v6, %v5181_v62 }
 0x13e   : >> { %3971 = vmatprep.subr.mxu1 %v2672_v32  ;;  %4389 = vmatprep.mubr.msk.bf16.mxu0 %vm1195_vm14, %v4657_v18  ;;  %v2670_v59 = vmax.f32 %v1734_v49, 0.0  ;;  %v1723_v18 = vadd.f32 %v4283_v43, %v4875_v6  ;;  %v2653_v32 = vmax.f32 %v1667_v2, 0.0  ;;  %v2668_v49 = vmax.f32 %v1726_v14, 0.0 }
 0x13f   : >> { %v5237_v13 = vpop.f32.mrf.mxu0  ;;  %3972 = vmatpush3.msra.mxu1 %v2656_v0  ;;  %v1659_v0 = vadd.f32 %v5177_v61, %v4875_v6  ;;  %v2652_v46 = vmax.f32 %v1662_v7, 0.0  ;;  %v1715_v61 = vadd.f32 %v4875_v6, %v1714_v44  ;;  %v2666_v14 = vmax.f32 %v1718_v63, 0.0 }
 0x140   : >> { %3973 = vmatprep.subr.mxu1 %v2671_v11  ;;  %v1654_v11 = vadd.f32 %v4875_v6, %v5187_v8  ;;  %v2667_v43 = vmax.f32 %v1723_v18, 0.0  ;;  %v1710_v8 = vadd.f32 %v5211_v28, %v4875_v6  ;;  %v4665_v18 = vld [vmem:[%s4978_s29 + $0x230] sm:$0xff]   ;;  %v2649_v28 = vmax.f32 %v1651_v52, 0.0  ;;  %v4666_v52 = vld [vmem:[%s4978_s29 + $0x238] sm:$0xff]  }
 0x141   : >> { %v5242_v30 = vpop.f32.mrf.mxu0  ;;  %3974 = vmatpush3.msra.mxu1 %v2655_v9  ;;  %v2651_v53 = vmax.f32 %v1659_v0, 0.0  ;;  %v2665_v62 = vmax.f32 %v1715_v61, 0.0  ;;  %v1699_v63 = vadd.f32 %v4875_v6, %v5209_v26  ;;  %v1630_v61 = vadd.f32 %v5159_v51, %v4875_v6 }
 0x142   : >> { %3975 = vmatprep.subr.mxu1 %v2670_v59  ;;  %v1646_v59 = vadd.f32 %v5171_v57, %v4875_v6  ;;  %v2650_v44 = vmax.f32 %v1654_v11, 0.0  ;;  %v2664_v0 = vmax.f32 %v1710_v8, 0.0  ;;  %v1702_v57 = vadd.f32 %v4875_v6, %v5215_v34 }
 0x143   : >> { %v5249_v45 = vpop.f32.mrf.mxu0  ;;  %3976 = vmatpush3.msra.mxu1 %v2654_v12  ;;  %v4662_v12 = vld [vmem:[%s4978_s29 + $0x228] sm:$0xff]   ;;  %v1691_v8 = vadd.f32 %v5193_v15, %v4875_v6  ;;  %v1686_v51 = vadd.f32 %v4875_v6, %v5203_v22  ;;  %v1619_v22 = vadd.f32 %v4875_v6, %v5157_v50  ;;  %v6216_v50 = vmov 0.00390625  }
 0x144   : >> { %3977 = vmatprep.subr.mxu1 %v2669_v20  ;;  %v1643_v20 = vadd.f32 %v5165_v55, %v4875_v6 }
 0x145   : >> { %v5254_v9 = vpop.f32.mrf.mxu0  ;;  %4390 = vmatmul.mubr.msk.bf16.gmra.mxu0 %vm1195_vm14, %v4658_v58  ;;  %3978 = vmatpush3.msra.mxu1 %v2653_v32  ;;  %v1707_v58 = vadd.f32 %v5205_v24, %v4875_v6  ;;  %v2648_v32 = vmax.f32 %v1646_v59, 0.0  ;;  %v1627_v59 = vadd.f32 %v5150_v48, %v4875_v6  ;;  %v1683_v48 = vadd.f32 %v4875_v6, %v5197_v16  ;;  %v4673_v16 = vld [vmem:[%s4978_s29 + $0x250] sm:$0xff]  }
 0x146   : >> { %3979 = vmatprep.subr.mxu1 %v2668_v49  ;;  %4393 = vmatprep.mubr.msk.bf16.mxu0 %vm1195_vm14, %v4661_v10  ;;  %v1638_v49 = vadd.f32 %v4875_v6, %v5175_v60  ;;  %v2647_v34 = vmax.f32 %v1643_v20, 0.0  ;;  %v1694_v60 = vadd.f32 %v5199_v17, %v4875_v6 }
 0x147   : >> { %v5261_v2 = vpop.f32.mrf.mxu0  ;;  %3980 = vmatpush3.msra.mxu1 %v2652_v46  ;;  %v2663_v55 = vmax.f32 %v1707_v58, 0.0  ;;  %v1635_v46 = vadd.f32 %v4875_v6, %v5169_v56  ;;  %v2661_v56 = vmax.f32 %v1699_v63, 0.0  ;;  %v2644_v58 = vmax.f32 %v1630_v61, 0.0  ;;  %v4677_v61 = vld [vmem:[%s4978_s29 + $0x260] sm:$0xff]  }
 0x148   : >> { %3981 = vmatprep.subr.mxu1 %v2667_v43  ;;  %v2662_v43 = vmax.f32 %v1702_v57, 0.0  ;;  %v2646_v26 = vmax.f32 %v1638_v49, 0.0  ;;  %v2643_v20 = vmax.f32 %v1627_v59, 0.0  ;;  %v2657_v49 = vmax.f32 %v1683_v48, 0.0  ;;  %v4681_v59 = vld [vmem:[%s4978_s29 + $0x270] sm:$0xff]  }
 0x149   : >> { %v5267_v7 = vpop.f32.mrf.mxu0  ;;  %3982 = vmatpush3.msra.mxu1 %v2651_v53  ;;  %v2645_v17 = vmax.f32 %v1635_v46, 0.0 }
 0x14a   : >> { %3983 = vmatprep.subr.mxu1 %v2666_v14  ;;  %v4669_v14 = vld [vmem:[%s4978_s29 + $0x240] sm:$0xff]  }
 0x14b   : >> { %v5275_v10 = vpop.f32.mrf.mxu0  ;;  %3984 = vmatpush3.msra.mxu1 %v2650_v44 }
 0x14c   : >> { %3985 = vmatprep.subr.mxu1 %v2665_v62  ;;  %v1622_v62 = vadd.f32 %v4875_v6, %v5163_v54  ;;  %v2658_v54 = vmax.f32 %v1686_v51, 0.0 }
 0x14d   : >> { %v5281_v24 = vpop.f32.mrf.mxu0  ;;  %4394 = vmatmul.mubr.msk.bf16.gmra.mxu0 %vm1195_vm14, %v4662_v12  ;;  %3986 = vmatpush3.msra.mxu1 %v2649_v28  ;;  %v2660_v12 = vmax.f32 %v1694_v60, 0.0 }
 0x14e   : >> { %3987 = vmatprep.subr.mxu1 %v2664_v0  ;;  %4397 = vmatprep.mubr.msk.bf16.mxu0 %vm1195_vm14, %v4665_v18  ;;  %v2659_v18 = vmax.f32 %v1691_v8, 0.0  ;;  %v2642_v0 = vmax.f32 %v1622_v62, 0.0  ;;  %v4682_v62 = vld [vmem:[%s4978_s29 + $0x278] sm:$0xff]  }
 0x14f   : >> { %v5289_v11 = vpop.f32.mrf.mxu0  ;;  %3988 = vmatpush3.msra.mxu1 %v2648_v32  ;;  %v4670_v32 = vld [vmem:[%s4978_s29 + $0x248] sm:$0xff]  }
 0x150   : >> { %3989 = vmatprep.subr.mxu1 %v2663_v55  ;;  %v2641_v55 = vmax.f32 %v1619_v22, 0.0 }
 0x151   : >> { %v5295_v53 = vpop.f32.mrf.mxu0  ;;  %3990 = vmatpush3.msra.mxu1 %v2647_v34 }
 0x152   : >> { %3991 = vmatprep.subr.mxu1 %v2662_v43  ;;  %v4674_v43 = vld [vmem:[%s4978_s29 + $0x258] sm:$0xff]  }
 0x153   : >> { %v5303_v44 = vpop.f32.mrf.mxu0  ;;  %3992 = vmatpush3.msra.mxu1 %v2646_v26 }
 0x154   : >> { %3993 = vmatprep.subr.mxu1 %v2661_v56 }
 0x155   : >> { %v4303_v15 = vpop.f32.mrf.mxu0  ;;  %4398 = vmatmul.mubr.msk.bf16.gmra.mxu0 %vm1195_vm14, %v4666_v52  ;;  %3994 = vmatpush3.msra.mxu1 %v2645_v17 }
 0x156   : >> { %3995 = vmatprep.subr.mxu1 %v2660_v12  ;;  %4401 = vmatprep.mubr.msk.bf16.mxu0 %vm1195_vm14, %v4669_v14  ;;  %v4678_v14 = vld [vmem:[%s4978_s29 + $0x268] sm:$0xff]  }
 0x157   : >> { %v5315_v28 = vpop.f32.mrf.mxu0  ;;  %3996 = vmatpush3.msra.mxu1 %v2644_v58 }
 0x158   : >> { %3997 = vmatprep.subr.mxu1 %v2659_v18  ;;  %v4685_v18 = vld [vmem:[%s4978_s29 + $0x280] sm:$0xff]  }
 0x159   : >> { %v4304_v57 = vpop.f32.mrf.mxu0  ;;  %3998 = vmatpush3.msra.mxu1 %v2643_v20 }
 0x15a   : >> { %3999 = vmatprep.subr.mxu1 %v2658_v54  ;;  %v1806_v54 = vadd.f32 %v4304_v57, %v4875_v6 }
 0x15b   : >> { %v1797_v63 = vpop.f32.mrf.mxu0  ;;  %4000 = vmatpush3.msra.mxu1 %v2642_v0 }
 0x15c   : >> { %4001 = vmatprep.subr.mxu1 %v2657_v49  ;;  %v2688_v1 = vmax.f32 %v1806_v54, 0.0 }
 0x15d   : >> { %v5319_v34 = vpop.f32.mrf.mxu0  ;;  %4402 = vmatmul.mubr.msk.bf16.gmra.mxu0 %vm1195_vm14, %v4670_v32  ;;  %4002 = vmatpush3.msra.mxu1 %v2641_v55  ;;  %v4686_v32 = vld [vmem:[%s4978_s29 + $0x288] sm:$0xff]   ;;  %v4687_v55 = vld [vmem:[%s4978_s29 + $0x290] sm:$0xff]  }
 0x15e   : >> { %4405 = vmatprep.mubr.msk.bf16.mxu0 %vm1195_vm14, %v4673_v16  ;;  %3816 = vmatmul.mubr.msk.f32.vlgmr.msra.gmra.mxu1 %vm6218_vm15, %v6216_v50 }
 0x15f   : >> { %v5326_v46 = vpop.f32.mrf.mxu0  ;;  %3817 = vmatprep.mubr.msk.f32.mxu1 %vm6220_vm0, %v6216_v50 }
 0x161   : >> { %v5331_v60 = vpop.f32.mrf.mxu0 }
 0x163   : >> { %v5335_v26 = vpop.f32.mrf.mxu0 }
 0x165   : >> { %v5337_v52 = vpop.f32.mrf.mxu0  ;;  %4406 = vmatmul.mubr.msk.bf16.gmra.mxu0 %vm1195_vm14, %v4674_v43  ;;  %v1803_v43 = vadd.f32 %v4303_v15, %v4875_v6 }
 0x166   : >> { %4409 = vmatprep.mubr.msk.bf16.mxu0 %vm1195_vm14, %v4677_v61 }
 0x167   : >> { %v5341_v8 = vpop.f32.mrf.mxu0  ;;  %v2687_v15 = vmax.f32 %v1803_v43, 0.0 }
 0x169   : >> { %v5343_v56 = vpop.f32.mrf.mxu0 }
 0x16b   : >> { %v5347_v17 = vpop.f32.mrf.mxu0 }
 0x16d   : >> { %v4315_v12 = vpop.f32.mrf.mxu0  ;;  %4410 = vmatmul.mubr.msk.bf16.gmra.mxu0 %vm1195_vm14, %v4678_v14 }
 0x16e   : >> { %4413 = vmatprep.mubr.msk.bf16.mxu0 %vm1195_vm14, %v4681_v59  ;;  %v1851_v43 = vadd.f32 %v4315_v12, %v4875_v6 }
 0x16f   : >> { %v1842_v51 = vpop.f32.mrf.mxu0 }
 0x170   : >> { %v2699_v12 = vmax.f32 %v1851_v43, 0.0  ;;  %v4691_v43 = vld [vmem:[%s4978_s29 + $0x2b0] sm:$0xff]  }
 0x171   : >> { %v4316_v58 = vpop.f32.mrf.mxu0 }
 0x173   : >> { %v1845_v48 = vpop.f32.mrf.mxu0 }
 0x175   : >> { %v4319_v20 = vpop.f32.mrf.mxu0  ;;  %4414 = vmatmul.mubr.msk.bf16.gmra.mxu0 %vm1195_vm14, %v4682_v62  ;;  %v1798_v62 = vadd.f32 %v4875_v6, %v1797_v63  ;;  %v1854_v63 = vadd.f32 %v4316_v58, %v4875_v6 }
 0x176   : >> { %4417 = vmatprep.mubr.msk.bf16.mxu0 %vm1195_vm14, %v4685_v18  ;;  %v1867_v49 = vadd.f32 %v4319_v20, %v4875_v6 }
 0x177   : >> { %v1858_v22 = vpop.f32.mrf.mxu0 }
 0x178   : >> { %v2703_v57 = vmax.f32 %v1867_v49, 0.0  ;;  %v1859_v20 = vadd.f32 %v4875_v6, %v1858_v22  ;;  %v2686_v49 = vmax.f32 %v1798_v62, 0.0 }
 0x179   : >> { %v4320_v0 = vpop.f32.mrf.mxu0 }
 0x17a   : >> { %v1870_v16 = vadd.f32 %v4320_v0, %v4875_v6  ;;  %v1795_v0 = vadd.f32 %v4875_v6, %v5315_v28  ;;  %v4689_v28 = vld [vmem:[%s4978_s29 + $0x2a0] sm:$0xff]  }
 0x17b   : >> { %v1861_v61 = vpop.f32.mrf.mxu0 }
 0x17c   : >> { %v2704_v14 = vmax.f32 %v1870_v16, 0.0  ;;  %v1862_v59 = vadd.f32 %v4875_v6, %v1861_v61  ;;  %v2701_v61 = vmax.f32 %v1859_v20, 0.0 }
 0x17d   : >> { %v5363_v18 = vpop.f32.mrf.mxu0  ;;  %4418 = vmatmul.mubr.msk.bf16.gmra.mxu0 %vm1195_vm14, %v4686_v32  ;;  %v1790_v32 = vadd.f32 %v5295_v53, %v4875_v6  ;;  %v1846_v53 = vadd.f32 %v4875_v6, %v1845_v48  ;;  %v1779_v48 = vadd.f32 %v4875_v6, %v5289_v11 }
 0x17e   : >> { %4006 = vmatprep.subr.mxu1 %v2704_v14  ;;  %4421 = vmatprep.mubr.msk.bf16.mxu0 %vm1195_vm14, %v4687_v55  ;;  %v2702_v54 = vmax.f32 %v1862_v59, 0.0  ;;  %v4688_v55 = vld [vmem:[%s4978_s29 + $0x298] sm:$0xff]   ;;  %v2685_v14 = vmax.f32 %v1795_v0, 0.0  ;;  %v2700_v59 = vmax.f32 %v1854_v63, 0.0 }
 0x17f   : >> { %v5370_v16 = vpop.f32.mrf.mxu0  ;;  %4007 = vmatpush3.msra.mxu1 %v2688_v1  ;;  %v1787_v1 = vadd.f32 %v5281_v24, %v4875_v6  ;;  %v2684_v62 = vmax.f32 %v1790_v32, 0.0  ;;  %v1843_v24 = vadd.f32 %v4875_v6, %v1842_v51  ;;  %v2698_v63 = vmax.f32 %v1846_v53, 0.0 }
 0x180   : >> { %4008 = vmatprep.subr.mxu1 %v2703_v57  ;;  %v1782_v57 = vadd.f32 %v4875_v6, %v5303_v44  ;;  %v1838_v44 = vadd.f32 %v5343_v56, %v4875_v6  ;;  %v2681_v56 = vmax.f32 %v1779_v48, 0.0  ;;  %v1827_v53 = vadd.f32 %v4875_v6, %v5341_v8  ;;  %v4692_v48 = vld [vmem:[%s4978_s29 + $0x2b8] sm:$0xff]  }
 0x181   : >> { %v5375_v22 = vpop.f32.mrf.mxu0  ;;  %4009 = vmatpush3.msra.mxu1 %v2687_v15  ;;  %v2683_v20 = vmax.f32 %v1787_v1, 0.0  ;;  %v2697_v11 = vmax.f32 %v1843_v24, 0.0  ;;  %v1758_v24 = vadd.f32 %v5242_v30, %v4875_v6  ;;  %v1814_v30 = vadd.f32 %v4875_v6, %v5335_v26 }
 0x182   : >> { %4010 = vmatprep.subr.mxu1 %v2702_v54  ;;  %v1774_v54 = vadd.f32 %v5267_v7, %v4875_v6  ;;  %v2682_v51 = vmax.f32 %v1782_v57, 0.0  ;;  %v2696_v1 = vmax.f32 %v1838_v44, 0.0  ;;  %v1830_v7 = vadd.f32 %v4875_v6, %v5347_v17 }
 0x183   : >> { %v5382_v58 = vpop.f32.mrf.mxu0  ;;  %4011 = vmatpush3.msra.mxu1 %v2686_v49  ;;  %v4690_v49 = vld [vmem:[%s4978_s29 + $0x2a8] sm:$0xff]   ;;  %v1819_v44 = vadd.f32 %v5319_v34, %v4875_v6  ;;  %v1747_v26 = vadd.f32 %v4875_v6, %v5237_v13 }
 0x184   : >> { %4012 = vmatprep.subr.mxu1 %v2701_v61  ;;  %v1771_v61 = vadd.f32 %v5254_v9, %v4875_v6 }
 0x185   : >> { %v5387_v15 = vpop.f32.mrf.mxu0  ;;  %4422 = vmatmul.mubr.msk.bf16.gmra.mxu0 %vm1195_vm14, %v4688_v55  ;;  %4013 = vmatpush3.msra.mxu1 %v2685_v14  ;;  %v1835_v55 = vadd.f32 %v5337_v52, %v4875_v6  ;;  %v2680_v14 = vmax.f32 %v1774_v54, 0.0  ;;  %v1755_v54 = vadd.f32 %v5231_v47, %v4875_v6  ;;  %v1811_v47 = vadd.f32 %v4875_v6, %v5326_v46  ;;  %v4695_v46 = vld [vmem:[%s4978_s29 + $0x2d0] sm:$0xff]  }
 0x186   : >> { %4014 = vmatprep.subr.mxu1 %v2700_v59  ;;  %4425 = vmatprep.mubr.msk.bf16.mxu0 %vm1195_vm14, %v4689_v28  ;;  %v1766_v59 = vadd.f32 %v4875_v6, %v5275_v10  ;;  %v2679_v17 = vmax.f32 %v1771_v61, 0.0  ;;  %v1822_v10 = vadd.f32 %v5331_v60, %v4875_v6 }
 0x187   : >> { %v5394_v0 = vpop.f32.mrf.mxu0  ;;  %4015 = vmatpush3.msra.mxu1 %v2684_v62  ;;  %v2695_v9 = vmax.f32 %v1835_v55, 0.0  ;;  %v1763_v62 = vadd.f32 %v4875_v6, %v5261_v2  ;;  %v2693_v2 = vmax.f32 %v1827_v53, 0.0  ;;  %v2676_v55 = vmax.f32 %v1758_v24, 0.0 }
 0x188   : >> { %4016 = vmatprep.subr.mxu1 %v2699_v12  ;;  %v2694_v12 = vmax.f32 %v1830_v7, 0.0  ;;  %v2678_v8 = vmax.f32 %v1766_v59, 0.0  ;;  %v2675_v61 = vmax.f32 %v1755_v54, 0.0  ;;  %v2689_v59 = vmax.f32 %v1811_v47, 0.0 }
 0x189   : >> { %v5400_v32 = vpop.f32.mrf.mxu0  ;;  %4017 = vmatpush3.msra.mxu1 %v2683_v20  ;;  %v2677_v60 = vmax.f32 %v1763_v62, 0.0  ;;  %v5464_v62 = vpop.f32.mrf.mxu1 }
 0x18a   : >> { %4018 = vmatprep.subr.mxu1 %v2698_v63  ;;  %v4693_v63 = vld [vmem:[%s4978_s29 + $0x2c0] sm:$0xff]  }
 0x18b   : >> { %v5408_v28 = vpop.f32.mrf.mxu0  ;;  %4019 = vmatpush3.msra.mxu1 %v2682_v51  ;;  %v5469_v24 = vpop.f32.mrf.mxu1 }
 0x18c   : >> { %4020 = vmatprep.subr.mxu1 %v2697_v11  ;;  %v1750_v11 = vadd.f32 %v4875_v6, %v5249_v45  ;;  %v2690_v45 = vmax.f32 %v1814_v30, 0.0 }
 0x18d   : >> { %v5414_v52 = vpop.f32.mrf.mxu0  ;;  %4426 = vmatmul.mubr.msk.bf16.gmra.mxu0 %vm1195_vm14, %v4690_v49  ;;  %4021 = vmatpush3.msra.mxu1 %v2681_v56  ;;  %v2692_v49 = vmax.f32 %v1822_v10, 0.0 }
 0x18e   : >> { %4022 = vmatprep.subr.mxu1 %v2696_v1  ;;  %4429 = vmatprep.mubr.msk.bf16.mxu0 %vm1195_vm14, %v4691_v43  ;;  %v2691_v43 = vmax.f32 %v1819_v44, 0.0  ;;  %v2674_v1 = vmax.f32 %v1750_v11, 0.0 }
 0x18f   : >> { %v5422_v57 = vpop.f32.mrf.mxu0  ;;  %4023 = vmatpush3.msra.mxu1 %v2680_v14  ;;  %v4694_v14 = vld [vmem:[%s4978_s29 + $0x2c8] sm:$0xff]  }
 0x190   : >> { %4024 = vmatprep.subr.mxu1 %v2695_v9  ;;  %v2673_v9 = vmax.f32 %v1747_v26, 0.0 }
 0x191   : >> { %v5428_v20 = vpop.f32.mrf.mxu0  ;;  %4025 = vmatpush3.msra.mxu1 %v2679_v17 }
 0x192   : >> { %4026 = vmatprep.subr.mxu1 %v2694_v12  ;;  %v4696_v12 = vld [vmem:[%s4978_s29 + $0x2d8] sm:$0xff]  }
 0x193   : >> { %v5436_v51 = vpop.f32.mrf.mxu0  ;;  %4027 = vmatpush3.msra.mxu1 %v2678_v8  ;;  %v4697_v8 = vld [vmem:[%s4978_s29 + $0x2e0] sm:$0xff]  }
 0x194   : >> { %4028 = vmatprep.subr.mxu1 %v2693_v2  ;;  %v5477_v2 = vpop.f32.mrf.mxu1 }
 0x195   : >> { %v4335_v34 = vpop.f32.mrf.mxu0  ;;  %4430 = vmatmul.mubr.msk.bf16.gmra.mxu0 %vm1195_vm14, %v4692_v48  ;;  %4029 = vmatpush3.msra.mxu1 %v2677_v60  ;;  %v4698_v60 = vld [vmem:[%s4978_s29 + $0x2e8] sm:$0xff]  }
 0x196   : >> { %4030 = vmatprep.subr.mxu1 %v2692_v49  ;;  %4433 = vmatprep.mubr.msk.bf16.mxu0 %vm1195_vm14, %v4693_v63  ;;  %v5485_v49 = vpop.f32.mrf.mxu1 }
 0x197   : >> { %v5448_v56 = vpop.f32.mrf.mxu0  ;;  %4031 = vmatpush3.msra.mxu1 %v2676_v55 }
 0x198   : >> { %4032 = vmatprep.subr.mxu1 %v2691_v43  ;;  %v5490_v11 = vpop.f32.mrf.mxu1 }
 0x199   : >> { %v4336_v7 = vpop.f32.mrf.mxu0  ;;  %4033 = vmatpush3.msra.mxu1 %v2675_v61  ;;  %6225 = vst [vmem:[#allocation22_spill] sm:$0xff] %v5490_v11 }
 0x19a   : >> { %4034 = vmatprep.subr.mxu1 %v2690_v45  ;;  %v5492_v61 = vpop.f32.mrf.mxu1 }
 0x19b   : >> { %v1925_v53 = vpop.f32.mrf.mxu0  ;;  %4035 = vmatpush3.msra.mxu1 %v2674_v1  ;;  %6226 = vst [vmem:[#allocation23_spill] sm:$0xff] %v5492_v61 }
 0x19c   : >> { %4036 = vmatprep.subr.mxu1 %v2689_v59  ;;  %v5494_v1 = vpop.f32.mrf.mxu1  ;;  %v1934_v59 = vadd.f32 %v4336_v7, %v4875_v6  ;;  %v1926_v21 = vadd.f32 %v4875_v6, %v1925_v53  ;;  %v1918_v53 = vadd.f32 %v5428_v20, %v4875_v6 }
 0x19d   : >> { %v5452_v17 = vpop.f32.mrf.mxu0  ;;  %4434 = vmatmul.mubr.msk.bf16.gmra.mxu0 %vm1195_vm14, %v4694_v14  ;;  %4037 = vmatpush3.msra.mxu1 %v2673_v9  ;;  %6227 = vst [vmem:[#allocation24_spill] sm:$0xff] %v5494_v1 }
 0x19e   : >> { %4437 = vmatprep.mubr.msk.bf16.mxu0 %vm1195_vm14, %v4695_v46  ;;  %3818 = vmatmul.mubr.msk.f32.vlgmr.msra.gmra.mxu1 %vm6222_vm1, %v6216_v50  ;;  %v5497_v9 = vpop.f32.mrf.mxu1  ;;  %v2720_v19 = vmax.f32 %v1934_v59, 0.0 }
 0x19f   : >> { %v5459_v13 = vpop.f32.mrf.mxu0  ;;  %3819 = vmatprep.mubr.msk.f32.mxu1 %vm6224_vm4, %v6216_v50  ;;  %6228 = vst [vmem:[#allocation25_spill] sm:$0xff] %v5497_v9 }
 0x1a0   : >> { %v5506_v25 = vpop.f32.mrf.mxu1 }
 0x1a1   : >> { %v5466_v10 = vpop.f32.mrf.mxu0  ;;  %6229 = vst [vmem:[#allocation26_spill] sm:$0xff] %v5506_v25 }
 0x1a3   : >> { %v5472_v48 = vpop.f32.mrf.mxu0 }
 0x1a5   : >> { %v5474_v44 = vpop.f32.mrf.mxu0  ;;  %4438 = vmatmul.mubr.msk.bf16.gmra.mxu0 %vm1195_vm14, %v4696_v12 }
 0x1a6   : >> { %4441 = vmatprep.mubr.msk.bf16.mxu0 %vm1195_vm14, %v4697_v8 }
 0x1a7   : >> { %v5480_v63 = vpop.f32.mrf.mxu0 }
 0x1a9   : >> { %v5482_v54 = vpop.f32.mrf.mxu0 }
 0x1ab   : >> { %v5487_v30 = vpop.f32.mrf.mxu0 }
 0x1ad   : >> { %v4347_v55 = vpop.f32.mrf.mxu0  ;;  %4442 = vmatmul.mubr.msk.bf16.gmra.mxu0 %vm1195_vm14, %v4698_v60  ;;  %v1931_v60 = vadd.f32 %v4335_v34, %v4875_v6  ;;  %vm6259_vm14 = vnez %v6190_v35 }
 0x1af   : >> { %v1970_v43 = vpop.f32.mrf.mxu0 }
 0x1b1   : >> { %v4348_v47 = vpop.f32.mrf.mxu0 }
 0x1b3   : >> { %v1973_v26 = vpop.f32.mrf.mxu0 }
 0x1b4   : >> { %v1974_v20 = vadd.f32 %v4875_v6, %v1973_v26  ;;  %v1966_v26 = vadd.f32 %v5482_v54, %v4875_v6 }
 0x1b5   : >> { %v4351_v45 = vpop.f32.mrf.mxu0 }
 0x1b6   : >> { %v1995_v12 = vadd.f32 %v4351_v45, %v4875_v6  ;;  %v2719_v45 = vmax.f32 %v1931_v60, 0.0  ;;  %v1910_v60 = vadd.f32 %v4875_v6, %v5436_v51  ;;  %v2730_v51 = vmax.f32 %v1974_v20, 0.0 }
 0x1b7   : >> { %v1986_v14 = vpop.f32.mrf.mxu0  ;;  %v1894_v20 = vadd.f32 %v4875_v6, %v5408_v28  ;;  %v1950_v28 = vadd.f32 %v5466_v10, %v4875_v6 }
 0x1b8   : >> { %v2735_v7 = vmax.f32 %v1995_v12, 0.0  ;;  %v1987_v29 = vadd.f32 %v4875_v6, %v1986_v14  ;;  %v5518_v14 = vpop.f32.mrf.mxu1 }
 0x1b9   : >> { %v4352_v46 = vpop.f32.mrf.mxu0  ;;  %6230 = vst [vmem:[#allocation27_spill] sm:$0xff] %v5518_v14 }
 0x1ba   : >> { %v1998_v8 = vadd.f32 %v4352_v46, %v4875_v6  ;;  %v1923_v46 = vadd.f32 %v4875_v6, %v5448_v56  ;;  %v2733_v12 = vmax.f32 %v1987_v29, 0.0  ;;  %v5530_v29 = vpop.f32.mrf.mxu1 }
 0x1bb   : >> { %v1989_v3 = vpop.f32.mrf.mxu0  ;;  %6231 = vst [vmem:[#allocation28_spill] sm:$0xff] %v5530_v29 }
 0x1bc   : >> { %v2736_v4 = vmax.f32 %v1998_v8, 0.0  ;;  %v1990_v5 = vadd.f32 %v4875_v6, %v1989_v3  ;;  %v1982_v3 = vadd.f32 %v4348_v47, %v4875_v6  ;;  %v2718_v8 = vmax.f32 %v1926_v21, 0.0 }
 0x1bd   : >> { %v5504_v23 = vpop.f32.mrf.mxu0  ;;  %v2717_v56 = vmax.f32 %v1923_v46, 0.0  ;;  %v2716_v21 = vmax.f32 %v1918_v53, 0.0  ;;  %v1907_v46 = vadd.f32 %v4875_v6, %v5422_v57  ;;  %v2714_v53 = vmax.f32 %v1910_v60, 0.0 }
 0x1be   : >> { %4041 = vmatprep.subr.mxu1 %v2736_v4  ;;  %v2734_v59 = vmax.f32 %v1990_v5, 0.0  ;;  %v1979_v4 = vadd.f32 %v4347_v55, %v4875_v6  ;;  %v2732_v5 = vmax.f32 %v1982_v3, 0.0  ;;  %v1963_v57 = vadd.f32 %v5474_v44, %v4875_v6 }
 0x1bf   : >> { %v5511_v34 = vpop.f32.mrf.mxu0  ;;  %4042 = vmatpush3.msra.mxu1 %v2720_v19  ;;  %v1915_v19 = vadd.f32 %v5414_v52, %v4875_v6  ;;  %v1971_v52 = vadd.f32 %v4875_v6, %v1970_v43  ;;  %v5543_v43 = vpop.f32.mrf.mxu1  ;;  %v2713_v54 = vmax.f32 %v1907_v46, 0.0  ;;  %v1886_v46 = vadd.f32 %v5375_v22, %v4875_v6 }
 0x1c0   : >> { %4043 = vmatprep.subr.mxu1 %v2735_v7  ;;  %v2731_v55 = vmax.f32 %v1979_v4, 0.0  ;;  %6232 = vst [vmem:[#allocation29_spill] sm:$0xff] %v5543_v43  ;;  %v2727_v60 = vmax.f32 %v1963_v57, 0.0  ;;  %v1942_v22 = vadd.f32 %v4875_v6, %v5472_v48 }
 0x1c1   : >> { %v5516_v41 = vpop.f32.mrf.mxu0  ;;  %4044 = vmatpush3.msra.mxu1 %v2719_v45  ;;  %v2715_v45 = vmax.f32 %v1915_v19, 0.0  ;;  %v2729_v4 = vmax.f32 %v1971_v52, 0.0  ;;  %v5557_v44 = vpop.f32.mrf.mxu1  ;;  %v1891_v52 = vadd.f32 %v4875_v6, %v5394_v0  ;;  %v1947_v0 = vadd.f32 %v5452_v17, %v4875_v6 }
 0x1c2   : >> { %4045 = vmatprep.subr.mxu1 %v2734_v59  ;;  %v1902_v59 = vadd.f32 %v5400_v32, %v4875_v6  ;;  %v1958_v32 = vadd.f32 %v4875_v6, %v5487_v30  ;;  %6233 = vst [vmem:[#allocation30_spill] sm:$0xff] %v5557_v44  ;;  %v2722_v48 = vmax.f32 %v1942_v22, 0.0 }
 0x1c3   : >> { %v5523_v47 = vpop.f32.mrf.mxu0  ;;  %4046 = vmatpush3.msra.mxu1 %v2718_v8  ;;  %v2709_v10 = vmax.f32 %v1891_v52, 0.0 }
 0x1c4   : >> { %4047 = vmatprep.subr.mxu1 %v2733_v12  ;;  %v1899_v12 = vadd.f32 %v5387_v15, %v4875_v6  ;;  %v1955_v15 = vadd.f32 %v4875_v6, %v5480_v63  ;;  %v5571_v63 = vpop.f32.mrf.mxu1 }
 0x1c5   : >> { %v5528_v7 = vpop.f32.mrf.mxu0  ;;  %4048 = vmatpush3.msra.mxu1 %v2717_v56  ;;  %v2728_v56 = vmax.f32 %v1966_v26, 0.0  ;;  %v2710_v26 = vmax.f32 %v1894_v20, 0.0  ;;  %6234 = vst [vmem:[#allocation31_spill] sm:$0xff] %v5571_v63  ;;  %v1875_v20 = vadd.f32 %v4875_v6, %v5370_v16 }
 0x1c6   : >> { %4049 = vmatprep.subr.mxu1 %v2732_v5  ;;  %v2712_v5 = vmax.f32 %v1902_v59, 0.0  ;;  %v2725_v59 = vmax.f32 %v1955_v15, 0.0  ;;  %v5583_v17 = vpop.f32.mrf.mxu1 }
 0x1c7   : >> { %v5535_v3 = vpop.f32.mrf.mxu0  ;;  %4050 = vmatpush3.msra.mxu1 %v2716_v21 }
 0x1c8   : >> { %4051 = vmatprep.subr.mxu1 %v2731_v55  ;;  %v2711_v55 = vmax.f32 %v1899_v12, 0.0  ;;  %v2708_v12 = vmax.f32 %v1886_v46, 0.0 }
 0x1c9   : >> { %v5541_v8 = vpop.f32.mrf.mxu0  ;;  %4052 = vmatpush3.msra.mxu1 %v2715_v45  ;;  %v2726_v45 = vmax.f32 %v1958_v32, 0.0  ;;  %v2723_v32 = vmax.f32 %v1947_v0, 0.0 }
 0x1ca   : >> { %4053 = vmatprep.subr.mxu1 %v2730_v51 }
 0x1cb   : >> { %v5549_v19 = vpop.f32.mrf.mxu0  ;;  %4054 = vmatpush3.msra.mxu1 %v2714_v53  ;;  %v1883_v53 = vadd.f32 %v5363_v18, %v4875_v6  ;;  %v1939_v18 = vadd.f32 %v4875_v6, %v5459_v13 }
 0x1cc   : >> { %4055 = vmatprep.subr.mxu1 %v2729_v4  ;;  %v2724_v4 = vmax.f32 %v1950_v28, 0.0  ;;  %v2705_v28 = vmax.f32 %v1875_v20, 0.0 }
 0x1cd   : >> { %v5555_v21 = vpop.f32.mrf.mxu0  ;;  %4056 = vmatpush3.msra.mxu1 %v2713_v54  ;;  %v1878_v54 = vadd.f32 %v4875_v6, %v5382_v58  ;;  %v5589_v58 = vpop.f32.mrf.mxu1  ;;  %v2721_v52 = vmax.f32 %v1939_v18, 0.0 }
 0x1ce   : >> { %4057 = vmatprep.subr.mxu1 %v2728_v56  ;;  %6235 = vst [vmem:[#allocation32_spill] sm:$0xff] %v5589_v58 }
 0x1cf   : >> { %v5563_v30 = vpop.f32.mrf.mxu0  ;;  %4058 = vmatpush3.msra.mxu1 %v2712_v5  ;;  %v2707_v5 = vmax.f32 %v1883_v53, 0.0  ;;  %v2706_v15 = vmax.f32 %v1878_v54, 0.0  ;;  %v5593_v46 = vpop.f32.mrf.mxu1 }
 0x1d0   : >> { %4059 = vmatprep.subr.mxu1 %v2727_v60 }
 0x1d1   : >> { %v5569_v51 = vpop.f32.mrf.mxu0  ;;  %4060 = vmatpush3.msra.mxu1 %v2711_v55  ;;  %v5605_v0 = vpop.f32.mrf.mxu1 }
 0x1d2   : >> { %4061 = vmatprep.subr.mxu1 %v2726_v45 }
 0x1d3   : >> { %v5577_v57 = vpop.f32.mrf.mxu0  ;;  %4062 = vmatpush3.msra.mxu1 %v2710_v26 }
 0x1d4   : >> { %4063 = vmatprep.subr.mxu1 %v2725_v59 }
 0x1d5   : >> { %v4367_v56 = vpop.f32.mrf.mxu0  ;;  %4064 = vmatpush3.msra.mxu1 %v2709_v10  ;;  %v5611_v10 = vpop.f32.mrf.mxu1 }
 0x1d6   : >> { %4065 = vmatprep.subr.mxu1 %v2724_v4  ;;  %v2059_v11 = vadd.f32 %v4367_v56, %v4875_v6 }
 0x1d7   : >> { %v2050_v60 = vpop.f32.mrf.mxu0  ;;  %4066 = vmatpush3.msra.mxu1 %v2708_v12  ;;  %v5615_v12 = vpop.f32.mrf.mxu1 }
 0x1d8   : >> { %4067 = vmatprep.subr.mxu1 %v2723_v32 }
 0x1d9   : >> { %v4368_v55 = vpop.f32.mrf.mxu0  ;;  %4068 = vmatpush3.msra.mxu1 %v2707_v5  ;;  %v5619_v18 = vpop.f32.mrf.mxu1 }
 0x1da   : >> { %4069 = vmatprep.subr.mxu1 %v2722_v48  ;;  %6240 = vst [vmem:[#allocation33_spill] sm:$0xff] %v5619_v18  ;;  %v2062_v33 = vadd.f32 %v4368_v55, %v4875_v6 }
 0x1db   : >> { %v2053_v45 = vpop.f32.mrf.mxu0  ;;  %4070 = vmatpush3.msra.mxu1 %v2706_v15  ;;  %v5621_v48 = vpop.f32.mrf.mxu1 }
 0x1dc   : >> { %4071 = vmatprep.subr.mxu1 %v2721_v52  ;;  %6241 = vst [vmem:[#allocation34_spill] sm:$0xff] %v5621_v48  ;;  %v2752_v14 = vmax.f32 %v2062_v33, 0.0  ;;  %v2054_v43 = vadd.f32 %v4875_v6, %v2053_v45  ;;  %v2046_v33 = vadd.f32 %v5569_v51, %v4875_v6 }
 0x1dd   : >> { %v5591_v13 = vpop.f32.mrf.mxu0  ;;  %4072 = vmatpush3.msra.mxu1 %v2705_v28  ;;  %v5623_v28 = vpop.f32.mrf.mxu1 }
 0x1de   : >> { %3820 = vmatmul.mubr.msk.f32.vlgmr.msra.gmra.mxu1 %vm6237_vm2, %v6216_v50  ;;  %6242 = vst [vmem:[#allocation35_spill] sm:$0xff] %v5623_v28  ;;  %v2750_v45 = vmax.f32 %v2054_v43, 0.0  ;;  %v2748_v43 = vmax.f32 %v2046_v33, 0.0 }
 0x1df   : >> { %v5598_v16 = vpop.f32.mrf.mxu0  ;;  %3821 = vmatprep.mubr.msk.f32.mxu1 %vm6239_vm5, %v6216_v50  ;;  %v5626_v39 = vpop.f32.mrf.mxu1 }
 0x1e0   : >> { %6243 = vst [vmem:[#allocation36_spill] sm:$0xff] %v5626_v39 }
 0x1e1   : >> { %v5603_v26 = vpop.f32.mrf.mxu0  ;;  %v5635_v25 = vpop.f32.mrf.mxu1 }
 0x1e2   : >> { %6244 = vst [vmem:[#allocation37_spill] sm:$0xff] %v5635_v25 }
 0x1e3   : >> { %v5607_v59 = vpop.f32.mrf.mxu0 }
 0x1e5   : >> { %v5609_v53 = vpop.f32.mrf.mxu0 }
 0x1e7   : >> { %v5613_v4 = vpop.f32.mrf.mxu0 }
 0x1e9   : >> { %v4376_v22 = vpop.f32.mrf.mxu0 }
 0x1eb   : >> { %v5617_v54 = vpop.f32.mrf.mxu0 }
 0x1ed   : >> { %v4379_v32 = vpop.f32.mrf.mxu0 }
 0x1ef   : >> { %v2098_v5 = vpop.f32.mrf.mxu0 }
 0x1f1   : >> { %v4380_v20 = vpop.f32.mrf.mxu0 }
 0x1f3   : >> { %v2101_v15 = vpop.f32.mrf.mxu0 }
 0x1f4   : >> { %v2102_v51 = vadd.f32 %v4875_v6, %v2101_v15  ;;  %v2094_v15 = vadd.f32 %v4376_v22, %v4875_v6 }
 0x1f5   : >> { %v4383_v52 = vpop.f32.mrf.mxu0 }
 0x1f6   : >> { %v2123_v61 = vadd.f32 %v4383_v52, %v4875_v6  ;;  %v2751_v52 = vmax.f32 %v2059_v11, 0.0 }
 0x1f7   : >> { %v2114_v27 = vpop.f32.mrf.mxu0 }
 0x1f8   : >> { %v2767_v55 = vmax.f32 %v2123_v61, 0.0  ;;  %v2115_v39 = vadd.f32 %v4875_v6, %v2114_v27  ;;  %v5646_v61 = vpop.f32.mrf.mxu1  ;;  %v2107_v27 = vadd.f32 %v4379_v32, %v4875_v6 }
 0x1f9   : >> { %v4384_v42 = vpop.f32.mrf.mxu0  ;;  %6245 = vst [vmem:[#allocation38_spill] sm:$0xff] %v5646_v61 }
 0x1fa   : >> { %v2126_v9 = vadd.f32 %v4384_v42, %v4875_v6  ;;  %v2051_v42 = vadd.f32 %v4875_v6, %v2050_v60  ;;  %v2765_v11 = vmax.f32 %v2115_v39, 0.0  ;;  %v5658_v39 = vpop.f32.mrf.mxu1  ;;  %v2763_v32 = vmax.f32 %v2107_v27, 0.0 }
 0x1fb   : >> { %v2117_v18 = vpop.f32.mrf.mxu0  ;;  %6246 = vst [vmem:[#allocation39_spill] sm:$0xff] %v5658_v39  ;;  %v2091_v27 = vadd.f32 %v5609_v53, %v4875_v6 }
 0x1fc   : >> { %v2768_v1 = vmax.f32 %v2126_v9, 0.0  ;;  %v2118_v48 = vadd.f32 %v4875_v6, %v2117_v18  ;;  %v2110_v9 = vadd.f32 %v4380_v20, %v4875_v6 }
 0x1fd   : >> { %v5633_v28 = vpop.f32.mrf.mxu0 }
 0x1fe   : >> { %4076 = vmatprep.subr.mxu1 %v2768_v1  ;;  %v2766_v56 = vmax.f32 %v2118_v48, 0.0  ;;  %v2043_v1 = vadd.f32 %v5555_v21, %v4875_v6  ;;  %v2764_v20 = vmax.f32 %v2110_v9, 0.0  ;;  %v2038_v48 = vadd.f32 %v4875_v6, %v5577_v57 }
 0x1ff   : >> { %v5639_v29 = vpop.f32.mrf.mxu0  ;;  %4077 = vmatpush3.msra.mxu1 %v2752_v14  ;;  %v2749_v14 = vmax.f32 %v2051_v42, 0.0  ;;  %v2099_v21 = vadd.f32 %v4875_v6, %v2098_v5  ;;  %v2035_v42 = vadd.f32 %v4875_v6, %v5563_v30  ;;  %v2030_v57 = vadd.f32 %v5541_v8, %v4875_v6  ;;  %v5670_v5 = vpop.f32.mrf.mxu1 }
 0x200   : >> { %4078 = vmatprep.subr.mxu1 %v2767_v55  ;;  %v2746_v33 = vmax.f32 %v2038_v48, 0.0  ;;  %6247 = vst [vmem:[#allocation40_spill] sm:$0xff] %v5670_v5  ;;  %v2086_v8 = vadd.f32 %v4875_v6, %v5617_v54  ;;  %v2759_v48 = vmax.f32 %v2091_v27, 0.0 }
 0x201   : >> { %v5644_v18 = vpop.f32.mrf.mxu0  ;;  %4079 = vmatpush3.msra.mxu1 %v2751_v52  ;;  %v2747_v52 = vmax.f32 %v2043_v1, 0.0  ;;  %v2761_v30 = vmax.f32 %v2099_v21, 0.0  ;;  %v2745_v22 = vmax.f32 %v2035_v42, 0.0  ;;  %v5684_v53 = vpop.f32.mrf.mxu1  ;;  %v2019_v21 = vadd.f32 %v4875_v6, %v5535_v3 }
 0x202   : >> { %4080 = vmatprep.subr.mxu1 %v2766_v56  ;;  %v2762_v56 = vmax.f32 %v2102_v51, 0.0  ;;  %v2022_v51 = vadd.f32 %v4875_v6, %v5549_v19  ;;  %6248 = vst [vmem:[#allocation41_spill] sm:$0xff] %v5684_v53  ;;  %v2078_v19 = vadd.f32 %v5603_v26, %v4875_v6  ;;  %v2014_v42 = vadd.f32 %v5516_v41, %v4875_v6 }
 0x203   : >> { %v5651_v60 = vpop.f32.mrf.mxu0  ;;  %4081 = vmatpush3.msra.mxu1 %v2750_v45  ;;  %v2075_v3 = vadd.f32 %v5591_v13, %v4875_v6  ;;  %v2741_v26 = vmax.f32 %v2019_v21, 0.0  ;;  %v2070_v41 = vadd.f32 %v4875_v6, %v5607_v59 }
 0x204   : >> { %4082 = vmatprep.subr.mxu1 %v2765_v11  ;;  %v2027_v11 = vadd.f32 %v5528_v7, %v4875_v6  ;;  %v2083_v7 = vadd.f32 %v4875_v6, %v5613_v4  ;;  %v5698_v4 = vpop.f32.mrf.mxu1 }
 0x205   : >> { %v5656_v55 = vpop.f32.mrf.mxu0  ;;  %4083 = vmatpush3.msra.mxu1 %v2749_v14  ;;  %v2760_v14 = vmax.f32 %v2094_v15, 0.0  ;;  %v2742_v15 = vmax.f32 %v2022_v51, 0.0  ;;  %6249 = vst [vmem:[#allocation42_spill] sm:$0xff] %v5698_v4  ;;  %v2003_v51 = vadd.f32 %v4875_v6, %v5511_v34  ;;  %v2754_v59 = vmax.f32 %v2070_v41, 0.0 }
 0x206   : >> { %4084 = vmatprep.subr.mxu1 %v2764_v20  ;;  %v2744_v20 = vmax.f32 %v2030_v57, 0.0  ;;  %v2757_v57 = vmax.f32 %v2083_v7, 0.0  ;;  %v5710_v13 = vpop.f32.mrf.mxu1 }
 0x207   : >> { %v5663_v9 = vpop.f32.mrf.mxu0  ;;  %4085 = vmatpush3.msra.mxu1 %v2748_v43 }
 0x208   : >> { %4086 = vmatprep.subr.mxu1 %v2763_v32  ;;  %v2743_v32 = vmax.f32 %v2027_v11, 0.0  ;;  %v2740_v11 = vmax.f32 %v2014_v42, 0.0 }
 0x209   : >> { %v5668_v45 = vpop.f32.mrf.mxu0  ;;  %4087 = vmatpush3.msra.mxu1 %v2747_v52  ;;  %v2758_v52 = vmax.f32 %v2086_v8, 0.0  ;;  %v2755_v8 = vmax.f32 %v2075_v3, 0.0 }
 0x20a   : >> { %4088 = vmatprep.subr.mxu1 %v2762_v56 }
 0x20b   : >> { %v5676_v1 = vpop.f32.mrf.mxu0  ;;  %4089 = vmatpush3.msra.mxu1 %v2746_v33  ;;  %v2011_v33 = vadd.f32 %v5504_v23, %v4875_v6  ;;  %v2067_v23 = vadd.f32 %v4875_v6, %v5598_v16 }
 0x20c   : >> { %4090 = vmatprep.subr.mxu1 %v2761_v30  ;;  %v2756_v30 = vmax.f32 %v2078_v19, 0.0  ;;  %v2737_v19 = vmax.f32 %v2003_v51, 0.0 }
 0x20d   : >> { %v5682_v43 = vpop.f32.mrf.mxu0  ;;  %4091 = vmatpush3.msra.mxu1 %v2745_v22  ;;  %v2006_v22 = vadd.f32 %v4875_v6, %v5523_v47  ;;  %v5716_v47 = vpop.f32.mrf.mxu1  ;;  %v2753_v21 = vmax.f32 %v2067_v23, 0.0 }
 0x20e   : >> { %4092 = vmatprep.subr.mxu1 %v2760_v14  ;;  %6250 = vst [vmem:[#allocation43_spill] sm:$0xff] %v5716_v47 }
 0x20f   : >> { %v5690_v54 = vpop.f32.mrf.mxu0  ;;  %4093 = vmatpush3.msra.mxu1 %v2744_v20  ;;  %v2739_v20 = vmax.f32 %v2011_v33, 0.0  ;;  %v2738_v7 = vmax.f32 %v2006_v22, 0.0  ;;  %v5720_v42 = vpop.f32.mrf.mxu1 }
 0x210   : >> { %4094 = vmatprep.subr.mxu1 %v2759_v48 }
 0x211   : >> { %v5696_v56 = vpop.f32.mrf.mxu0  ;;  %4095 = vmatpush3.msra.mxu1 %v2743_v32  ;;  %v5732_v3 = vpop.f32.mrf.mxu1 }
 0x212   : >> { %4096 = vmatprep.subr.mxu1 %v2758_v52 }
 0x213   : >> { %v5704_v27 = vpop.f32.mrf.mxu0  ;;  %4097 = vmatpush3.msra.mxu1 %v2742_v15 }
 0x214   : >> { %4098 = vmatprep.subr.mxu1 %v2757_v57 }
 0x215   : >> { %v4399_v14 = vpop.f32.mrf.mxu0  ;;  %4099 = vmatpush3.msra.mxu1 %v2741_v26  ;;  %v5738_v26 = vpop.f32.mrf.mxu1 }
 0x216   : >> { %4100 = vmatprep.subr.mxu1 %v2756_v30 }
 0x217   : >> { %v2178_v48 = vpop.f32.mrf.mxu0  ;;  %4101 = vmatpush3.msra.mxu1 %v2740_v11  ;;  %v5742_v11 = vpop.f32.mrf.mxu1 }
 0x218   : >> { %4102 = vmatprep.subr.mxu1 %v2755_v8 }
 0x219   : >> { %v4400_v32 = vpop.f32.mrf.mxu0  ;;  %4103 = vmatpush3.msra.mxu1 %v2739_v20  ;;  %v5746_v23 = vpop.f32.mrf.mxu1 }
 0x21a   : >> { %4104 = vmatprep.subr.mxu1 %v2754_v59  ;;  %6255 = vst [vmem:[#allocation44_spill] sm:$0xff] %v5746_v23  ;;  %v2190_v36 = vadd.f32 %v4400_v32, %v4875_v6  ;;  %v2187_v23 = vadd.f32 %v4399_v14, %v4875_v6 }
 0x21b   : >> { %v2181_v52 = vpop.f32.mrf.mxu0  ;;  %4105 = vmatpush3.msra.mxu1 %v2738_v7  ;;  %v5748_v59 = vpop.f32.mrf.mxu1 }
 0x21c   : >> { %4106 = vmatprep.subr.mxu1 %v2753_v21  ;;  %6256 = vst [vmem:[#allocation45_spill] sm:$0xff] %v5748_v59  ;;  %v2784_v58 = vmax.f32 %v2190_v36, 0.0  ;;  %v2182_v47 = vadd.f32 %v4875_v6, %v2181_v52  ;;  %v2174_v36 = vadd.f32 %v5696_v56, %v4875_v6 }
 0x21d   : >> { %v5718_v16 = vpop.f32.mrf.mxu0  ;;  %4107 = vmatpush3.msra.mxu1 %v2737_v19  ;;  %v5750_v19 = vpop.f32.mrf.mxu1 }
 0x21e   : >> { %3822 = vmatmul.mubr.msk.f32.vlgmr.msra.gmra.mxu1 %vm6252_vm6, %v6216_v50  ;;  %6257 = vst [vmem:[#allocation46_spill] sm:$0xff] %v5750_v19  ;;  %v2782_v14 = vmax.f32 %v2182_v47, 0.0  ;;  %v2780_v47 = vmax.f32 %v2174_v36, 0.0 }
 0x21f   : >> { %v5725_v34 = vpop.f32.mrf.mxu0  ;;  %3823 = vmatprep.mubr.msk.f32.mxu1 %vm6254_vm12, %v6216_v50  ;;  %v5753_v5 = vpop.f32.mrf.mxu1 }
 0x220   : >> { %6258 = vst [vmem:[#allocation47_spill] sm:$0xff] %v5753_v5 }
 0x221   : >> { %v5730_v15 = vpop.f32.mrf.mxu0  ;;  %v5762_v44 = vpop.f32.mrf.mxu1 }
 0x223   : >> { %v5734_v57 = vpop.f32.mrf.mxu0 }
 0x225   : >> { %v5736_v33 = vpop.f32.mrf.mxu0 }
 0x227   : >> { %v5740_v30 = vpop.f32.mrf.mxu0 }
 0x229   : >> { %v4408_v41 = vpop.f32.mrf.mxu0 }
 0x22b   : >> { %v5744_v22 = vpop.f32.mrf.mxu0 }
 0x22d   : >> { %v4411_v8 = vpop.f32.mrf.mxu0 }
 0x22f   : >> { %v2226_v20 = vpop.f32.mrf.mxu0 }
 0x231   : >> { %v4412_v51 = vpop.f32.mrf.mxu0 }
 0x233   : >> { %v2229_v7 = vpop.f32.mrf.mxu0 }
 0x234   : >> { %v2230_v56 = vadd.f32 %v4875_v6, %v2229_v7  ;;  %v2222_v7 = vadd.f32 %v4408_v41, %v4875_v6 }
 0x235   : >> { %v4415_v21 = vpop.f32.mrf.mxu0 }
 0x236   : >> { %v2251_v25 = vadd.f32 %v4415_v21, %v4875_v6  ;;  %v2783_v21 = vmax.f32 %v2187_v23, 0.0 }
 0x237   : >> { %v2242_v31 = vpop.f32.mrf.mxu0 }
 0x238   : >> { %v2799_v32 = vmax.f32 %v2251_v25, 0.0  ;;  %v2243_v5 = vadd.f32 %v4875_v6, %v2242_v31  ;;  %v5773_v25 = vpop.f32.mrf.mxu1  ;;  %v2235_v31 = vadd.f32 %v4411_v8, %v4875_v6 }
 0x239   : >> { %v4416_v61 = vpop.f32.mrf.mxu0 }
 0x23a   : >> { %v2254_v39 = vadd.f32 %v4416_v61, %v4875_v6  ;;  %v2179_v61 = vadd.f32 %v4875_v6, %v2178_v48  ;;  %v2795_v8 = vmax.f32 %v2235_v31, 0.0  ;;  %v2219_v31 = vadd.f32 %v5736_v33, %v4875_v6 }
 0x23b   : >> { %v2245_v63 = vpop.f32.mrf.mxu0 }
 0x23c   : >> { %v2800_v4 = vmax.f32 %v2254_v39, 0.0  ;;  %v2246_v59 = vadd.f32 %v4875_v6, %v2245_v63  ;;  %v2238_v39 = vadd.f32 %v4412_v51, %v4875_v6  ;;  %v2781_v48 = vmax.f32 %v2179_v61, 0.0 }
 0x23d   : >> { %v5760_v19 = vpop.f32.mrf.mxu0  ;;  %v2163_v61 = vadd.f32 %v4875_v6, %v5690_v54 }
 0x23e   : >> { %4111 = vmatprep.subr.mxu1 %v2800_v4  ;;  %v2798_v63 = vmax.f32 %v2246_v59, 0.0  ;;  %v2797_v4 = vmax.f32 %v2243_v5, 0.0  ;;  %v2796_v51 = vmax.f32 %v2238_v39, 0.0  ;;  %v2166_v59 = vadd.f32 %v4875_v6, %v5704_v27  ;;  %v5785_v5 = vpop.f32.mrf.mxu1 }
 0x23f   : >> { %v5766_v53 = vpop.f32.mrf.mxu0  ;;  %4112 = vmatpush3.msra.mxu1 %v2784_v58  ;;  %v2171_v58 = vadd.f32 %v5682_v43, %v4875_v6  ;;  %v2227_v43 = vadd.f32 %v4875_v6, %v2226_v20  ;;  %v2158_v27 = vadd.f32 %v5668_v45, %v4875_v6  ;;  %v2777_v41 = vmax.f32 %v2163_v61, 0.0 }
 0x240   : >> { %4113 = vmatprep.subr.mxu1 %v2799_v32  ;;  %v2778_v36 = vmax.f32 %v2166_v59, 0.0  ;;  %v5797_v20 = vpop.f32.mrf.mxu1  ;;  %v2214_v45 = vadd.f32 %v4875_v6, %v5744_v22  ;;  %v2791_v59 = vmax.f32 %v2219_v31, 0.0  ;;  %v2142_v61 = vadd.f32 %v5644_v18, %v4875_v6 }
 0x241   : >> { %v5771_v52 = vpop.f32.mrf.mxu0  ;;  %4114 = vmatpush3.msra.mxu1 %v2783_v21  ;;  %v2779_v21 = vmax.f32 %v2171_v58, 0.0  ;;  %v2793_v54 = vmax.f32 %v2227_v43, 0.0  ;;  %v2147_v43 = vadd.f32 %v4875_v6, %v5663_v9  ;;  %v2203_v9 = vadd.f32 %v5718_v16, %v4875_v6 }
 0x242   : >> { %4115 = vmatprep.subr.mxu1 %v2798_v63  ;;  %v2794_v63 = vmax.f32 %v2230_v56, 0.0  ;;  %v2150_v56 = vadd.f32 %v4875_v6, %v5676_v1  ;;  %v5811_v33 = vpop.f32.mrf.mxu1  ;;  %v2206_v1 = vadd.f32 %v5730_v15, %v4875_v6  ;;  %v2198_v18 = vadd.f32 %v4875_v6, %v5734_v57 }
 0x243   : >> { %v5778_v23 = vpop.f32.mrf.mxu0  ;;  %4116 = vmatpush3.msra.mxu1 %v2782_v14  ;;  %v2773_v15 = vmax.f32 %v2147_v43, 0.0 }
 0x244   : >> { %4117 = vmatprep.subr.mxu1 %v2797_v4  ;;  %v2155_v4 = vadd.f32 %v5656_v55, %v4875_v6  ;;  %v2211_v55 = vadd.f32 %v4875_v6, %v5740_v30  ;;  %v5825_v30 = vpop.f32.mrf.mxu1  ;;  %v2786_v57 = vmax.f32 %v2198_v18, 0.0  ;;  %v2371_v18 = vadd.f32 %v4875_v6, %v5469_v24 }
 0x245   : >> { %v5783_v32 = vpop.f32.mrf.mxu0  ;;  %4118 = vmatpush3.msra.mxu1 %v2781_v48  ;;  %v2792_v48 = vmax.f32 %v2222_v7, 0.0  ;;  %v2774_v7 = vmax.f32 %v2150_v56, 0.0  ;;  %v2131_v56 = vadd.f32 %v4875_v6, %v5639_v29 }
 0x246   : >> { %4119 = vmatprep.subr.mxu1 %v2796_v51  ;;  %v2776_v51 = vmax.f32 %v2158_v27, 0.0  ;;  %v2789_v27 = vmax.f32 %v2211_v55, 0.0  ;;  %v5837_v16 = vpop.f32.mrf.mxu1  ;;  %v2382_v55 = vadd.f32 %v5477_v2, %v4875_v6  ;;  %v2374_v2 = vadd.f32 %v4875_v6, %v5485_v49 }
 0x247   : >> { %v5790_v39 = vpop.f32.mrf.mxu0  ;;  %4120 = vmatpush3.msra.mxu1 %v2780_v47  ;;  %v2769_v29 = vmax.f32 %v2131_v56, 0.0 }
 0x248   : >> { %4121 = vmatprep.subr.mxu1 %v2795_v8  ;;  %v2775_v8 = vmax.f32 %v2155_v4, 0.0  ;;  %v2772_v4 = vmax.f32 %v2142_v61, 0.0  ;;  %v5845_v43 = vpop.f32.mrf.mxu1 }
 0x249   : >> { %v5795_v14 = vpop.f32.mrf.mxu0  ;;  %4122 = vmatpush3.msra.mxu1 %v2779_v21  ;;  %v2790_v21 = vmax.f32 %v2214_v45, 0.0  ;;  %v2787_v45 = vmax.f32 %v2203_v9, 0.0  ;;  %v2832_v9 = vmax.f32 %v2382_v55, 0.0 }
 0x24a   : >> { %4123 = vmatprep.subr.mxu1 %v2794_v63 }
 0x24b   : >> { %v5803_v58 = vpop.f32.mrf.mxu0  ;;  %4124 = vmatpush3.msra.mxu1 %v2778_v36  ;;  %v2139_v36 = vadd.f32 %v5633_v28, %v4875_v6  ;;  %v2195_v28 = vadd.f32 %v4875_v6, %v5725_v34  ;;  %v2379_v34 = vadd.f32 %v5464_v62, %v4875_v6  ;;  %v5856_v62 = vpop.f32.mrf.mxu1 }
 0x24c   : >> { %4125 = vmatprep.subr.mxu1 %v2793_v54  ;;  %v2788_v54 = vmax.f32 %v2206_v1, 0.0 }
 0x24d   : >> { %v5809_v47 = vpop.f32.mrf.mxu0  ;;  %4126 = vmatpush3.msra.mxu1 %v2777_v41  ;;  %v2134_v41 = vadd.f32 %v4875_v6, %v5651_v60  ;;  %v2785_v1 = vmax.f32 %v2195_v28, 0.0  ;;  %v5871_v24 = vpop.f32.mrf.mxu1 }
 0x24e   : >> { %4127 = vmatprep.subr.mxu1 %v2792_v48 }
 0x24f   : >> { %v5817_v22 = vpop.f32.mrf.mxu0  ;;  %4128 = vmatpush3.msra.mxu1 %v2776_v51  ;;  %v2771_v51 = vmax.f32 %v2139_v36, 0.0  ;;  %v2770_v60 = vmax.f32 %v2134_v41, 0.0  ;;  %v5875_v55 = vpop.f32.mrf.mxu1 }
 0x250   : >> { %4129 = vmatprep.subr.mxu1 %v2791_v59 }
 0x251   : >> { %v5823_v63 = vpop.f32.mrf.mxu0  ;;  %4130 = vmatpush3.msra.mxu1 %v2775_v8 }
 0x252   : >> { %4131 = vmatprep.subr.mxu1 %v2790_v21 }
 0x253   : >> { %v5831_v31 = vpop.f32.mrf.mxu0  ;;  %4132 = vmatpush3.msra.mxu1 %v2774_v7 }
 0x254   : >> { %4133 = vmatprep.subr.mxu1 %v2789_v27 }
 0x255   : >> { %v4431_v48 = vpop.f32.mrf.mxu0  ;;  %4134 = vmatpush3.msra.mxu1 %v2773_v15 }
 0x256   : >> { %4135 = vmatprep.subr.mxu1 %v2788_v54  ;;  %v2315_v61 = vadd.f32 %v4431_v48, %v4875_v6  ;;  %v2831_v54 = vmax.f32 %v2379_v34, 0.0  ;;  %v2830_v48 = vmax.f32 %v2374_v2, 0.0 }
 0x257   : >> { %v2306_v59 = vpop.f32.mrf.mxu0  ;;  %4136 = vmatpush3.msra.mxu1 %v2772_v4 }
 0x258   : >> { %4137 = vmatprep.subr.mxu1 %v2787_v45  ;;  %v2815_v4 = vmax.f32 %v2315_v61, 0.0  ;;  %v2307_v49 = vadd.f32 %v4875_v6, %v2306_v59 }
 0x259   : >> { %v4432_v8 = vpop.f32.mrf.mxu0  ;;  %4138 = vmatpush3.msra.mxu1 %v2771_v51  ;;  %v2829_v51 = vmax.f32 %v2371_v18, 0.0 }
 0x25a   : >> { %v2318_v21 = vadd.f32 %v4432_v8, %v4875_v6  ;;  %4139 = vmatprep.subr.mxu1 %v2786_v57  ;;  %v2813_v56 = vmax.f32 %v2307_v49, 0.0 }
 0x25b   : >> { %v2309_v7 = vpop.f32.mrf.mxu0  ;;  %4140 = vmatpush3.msra.mxu1 %v2770_v60 }
 0x25c   : >> { %v2816_v27 = vmax.f32 %v2318_v21, 0.0  ;;  %4141 = vmatprep.subr.mxu1 %v2785_v1  ;;  %v2310_v36 = vadd.f32 %v4875_v6, %v2309_v7  ;;  %v5877_v1 = vpop.f32.mrf.mxu1  ;;  %v2302_v7 = vadd.f32 %v5823_v63, %v4875_v6 }
 0x25d   : >> { %v5854_v15 = vpop.f32.mrf.mxu0  ;;  %4142 = vmatpush3.msra.mxu1 %v2769_v29 }
 0x25e   : >> { %3824 = vmatmul.mubr.msk.f32.vlgmr.msra.gmra.mxu1 %vm6259_vm14, %v6216_v50  ;;  %4146 = vmatprep.subr.mxu1 %v2832_v9  ;;  %v2814_v45 = vmax.f32 %v2310_v36, 0.0  ;;  %v5879_v29 = vpop.f32.mrf.mxu1 }
 0x25f   : >> { %v5864_v41 = vpop.f32.mrf.mxu0  ;;  %4147 = vmatpush3.msra.mxu1 %v2816_v27  ;;  %3825 = vmatprep.mubr.msk.f32.mxu1 %vm4945_vm11, %v6216_v50 }
 0x260   : >> { %4148 = vmatprep.subr.mxu1 %v2831_v54  ;;  %v5883_v2 = vpop.f32.mrf.mxu1  ;;  %v2299_v54 = vadd.f32 %v5809_v47, %v4875_v6 }
 0x261   : >> { %v5869_v28 = vpop.f32.mrf.mxu0  ;;  %4149 = vmatpush3.msra.mxu1 %v2815_v4 }
 0x262   : >> { %4150 = vmatprep.subr.mxu1 %v2830_v48  ;;  %v2812_v48 = vmax.f32 %v2302_v7, 0.0  ;;  %v2286_v7 = vadd.f32 %v5795_v14, %v4875_v6  ;;  %v2278_v14 = vadd.f32 %v4875_v6, %v5803_v58  ;;  %v2270_v58 = vadd.f32 %v5771_v52, %v4875_v6 }
 0x263   : >> { %v5873_v57 = vpop.f32.mrf.mxu0  ;;  %4151 = vmatpush3.msra.mxu1 %v2814_v45  ;;  %v2294_v45 = vadd.f32 %v4875_v6, %v5831_v31 }
 0x264   : >> { %4152 = vmatprep.subr.mxu1 %v2829_v51  ;;  %v5892_v51 = vpop.f32.mrf.mxu1  ;;  %v2804_v52 = vmax.f32 %v2270_v58, 0.0 }
 0x265   : >> { %v4439_v59 = vpop.f32.mrf.mxu0  ;;  %4153 = vmatpush3.msra.mxu1 %v2813_v56 }
 0x266   : >> { %v5900_v31 = vpop.f32.mrf.mxu1 }
 0x267   : >> { %v2338_v60 = vpop.f32.mrf.mxu0 }
 0x269   : >> { %v4440_v8 = vpop.f32.mrf.mxu0 }
 0x26a   : >> { %v2350_v47 = vadd.f32 %v4440_v8, %v4875_v6 }
 0x26b   : >> { %v2341_v34 = vpop.f32.mrf.mxu0 }
 0x26c   : >> { %v2342_v8 = vadd.f32 %v4875_v6, %v2341_v34  ;;  %v2334_v34 = vadd.f32 %v5869_v28, %v4875_v6 }
 0x26d   : >> { %v4443_v21 = vpop.f32.mrf.mxu0 }
 0x26e   : >> { %v2363_v27 = vadd.f32 %v4443_v21, %v4875_v6  ;;  %v2811_v21 = vmax.f32 %v2299_v54, 0.0  ;;  %v2283_v54 = vadd.f32 %v5783_v32, %v4875_v6  ;;  %v2275_v32 = vadd.f32 %v4875_v6, %v5790_v39 }
 0x26f   : >> { %v2354_v61 = vpop.f32.mrf.mxu0  ;;  %v2267_v39 = vadd.f32 %v5760_v19, %v4875_v6  ;;  %v2820_v28 = vmax.f32 %v2334_v34, 0.0 }
 0x270   : >> { %v2827_v63 = vmax.f32 %v2363_v27, 0.0  ;;  %v2355_v56 = vadd.f32 %v4875_v6, %v2354_v61  ;;  %v2347_v27 = vadd.f32 %v4439_v59, %v4875_v6  ;;  %v2339_v59 = vadd.f32 %v4875_v6, %v2338_v60 }
 0x271   : >> { %v4444_v9 = vpop.f32.mrf.mxu0  ;;  %v2331_v60 = vadd.f32 %v5854_v15, %v4875_v6  ;;  %v2803_v19 = vmax.f32 %v2267_v39, 0.0 }
 0x272   : >> { %v2366_v36 = vadd.f32 %v4444_v9, %v4875_v6  ;;  %v2291_v9 = vadd.f32 %v4875_v6, %v5817_v22  ;;  %v2825_v61 = vmax.f32 %v2355_v56, 0.0  ;;  %v2822_v56 = vmax.f32 %v2342_v8, 0.0 }
 0x273   : >> { %v2357_v18 = vpop.f32.mrf.mxu0  ;;  %v2819_v15 = vmax.f32 %v2331_v60, 0.0 }
 0x274   : >> { %v2828_v4 = vmax.f32 %v2366_v36, 0.0  ;;  %v2358_v49 = vadd.f32 %v4875_v6, %v2357_v18  ;;  %v2810_v18 = vmax.f32 %v2294_v45, 0.0  ;;  %v2809_v22 = vmax.f32 %v2291_v9, 0.0 }
 0x275   : >> { %v2823_v45 = vmax.f32 %v2347_v27, 0.0 }
 0x276   : >> { %4154 = vmatprep.subr.mxu1 %v2828_v4  ;;  %v2826_v36 = vmax.f32 %v2358_v49, 0.0  ;;  %v2824_v4 = vmax.f32 %v2350_v47, 0.0  ;;  %v2808_v49 = vmax.f32 %v2286_v7, 0.0  ;;  %v2821_v47 = vmax.f32 %v2339_v59, 0.0 }
 0x277   : >> { %4155 = vmatpush3.msra.mxu1 %v2812_v48  ;;  %v5908_v48 = vpop.f32.mrf.mxu1  ;;  %v2326_v7 = vadd.f32 %v4875_v6, %v5873_v57  ;;  %v2510_v57 = vadd.f32 %v5738_v26, %v4875_v6  ;;  %v2502_v26 = vadd.f32 %v4875_v6, %v5742_v11  ;;  %v2435_v11 = vadd.f32 %v4875_v6, %v5605_v0 }
 0x278   : >> { %4156 = vmatprep.subr.mxu1 %v2827_v63  ;;  %v2807_v63 = vmax.f32 %v2283_v54, 0.0  ;;  %v2259_v54 = vadd.f32 %v4875_v6, %v5766_v53  ;;  %v2443_v53 = vadd.f32 %v5593_v46, %v4875_v6 }
 0x279   : >> { %4157 = vmatpush3.msra.mxu1 %v2811_v21  ;;  %v2806_v21 = vmax.f32 %v2278_v14, 0.0  ;;  %v5917_v9 = vpop.f32.mrf.mxu1  ;;  %v2862_v34 = vmax.f32 %v2502_v26, 0.0 }
 0x27a   : >> { %4158 = vmatprep.subr.mxu1 %v2826_v36  ;;  %v2805_v36 = vmax.f32 %v2275_v32, 0.0  ;;  %v2801_v14 = vmax.f32 %v2259_v54, 0.0  ;;  %v2847_v46 = vmax.f32 %v2443_v53, 0.0 }
 0x27b   : >> { %4159 = vmatpush3.msra.mxu1 %v2810_v18  ;;  %v2262_v18 = vadd.f32 %v4875_v6, %v5778_v23  ;;  %v5927_v27 = vpop.f32.mrf.mxu1  ;;  %v2446_v23 = vadd.f32 %v5611_v10, %v4875_v6  ;;  %v2438_v10 = vadd.f32 %v4875_v6, %v5615_v12  ;;  %v2494_v12 = vadd.f32 %v5710_v13, %v4875_v6 }
 0x27c   : >> { %4160 = vmatprep.subr.mxu1 %v2825_v61  ;;  %v2323_v61 = vadd.f32 %v4875_v6, %v5864_v41  ;;  %v2507_v41 = vadd.f32 %v5720_v42, %v4875_v6  ;;  %v2499_v42 = vadd.f32 %v4875_v6, %v5732_v3  ;;  %v2430_v3 = vadd.f32 %v5583_v17, %v4875_v6 }
 0x27d   : >> { %4161 = vmatpush3.msra.mxu1 %v2809_v22  ;;  %v2818_v22 = vmax.f32 %v2326_v7, 0.0  ;;  %v5937_v8 = vpop.f32.mrf.mxu1  ;;  %v2848_v59 = vmax.f32 %v2446_v23, 0.0  ;;  %v2860_v13 = vmax.f32 %v2494_v12, 0.0  ;;  %v6266_v23 = vld [vmem:[#allocation39_spill] sm:$0xff] }
 0x27e   : >> { %4162 = vmatprep.subr.mxu1 %v2824_v4  ;;  %v2802_v4 = vmax.f32 %v2262_v18, 0.0  ;;  %v2863_v32 = vmax.f32 %v2507_v41, 0.0  ;;  %v2861_v60 = vmax.f32 %v2499_v42, 0.0  ;;  %v2844_v17 = vmax.f32 %v2430_v3, 0.0  ;;  %v6269_v42 = vld [vmem:[#allocation26_spill] sm:$0xff] }
 0x27f   : >> { %4163 = vmatpush3.msra.mxu1 %v2808_v49  ;;  %v2817_v49 = vmax.f32 %v2323_v61, 0.0 }
 0x280   : >> { %4164 = vmatprep.subr.mxu1 %v2823_v45  ;;  %v2864_v45 = vmax.f32 %v2510_v57, 0.0  ;;  %v6265_v57 = vld [vmem:[#allocation31_spill] sm:$0xff] }
 0x281   : >> { %4165 = vmatpush3.msra.mxu1 %v2807_v63  ;;  %v5947_v63 = vpop.f32.mrf.mxu1 }
 0x282   : >> { %4166 = vmatprep.subr.mxu1 %v2822_v56  ;;  %v2846_v56 = vmax.f32 %v2438_v10, 0.0 }
 0x283   : >> { %4167 = vmatpush3.msra.mxu1 %v2806_v21  ;;  %v5963_v58 = vpop.f32.mrf.mxu1  ;;  %v6260_v21 = vld [vmem:[#allocation41_spill] sm:$0xff] }
 0x284   : >> { %4168 = vmatprep.subr.mxu1 %v2821_v47  ;;  %v2491_v0 = vadd.f32 %v6260_v21, %v4875_v6  ;;  %v6261_v47 = vld [vmem:[#allocation30_spill] sm:$0xff]  ;;  %v6271_v21 = vld [vmem:[#allocation29_spill] sm:$0xff] }
 0x285   : >> { %4169 = vmatpush3.msra.mxu1 %v2805_v36  ;;  %v2427_v39 = vadd.f32 %v6261_v47, %v4875_v6  ;;  %v2845_v36 = vmax.f32 %v2435_v11, 0.0 }
 0x286   : >> { %4170 = vmatprep.subr.mxu1 %v2820_v28  ;;  %v6262_v28 = vld [vmem:[#allocation43_spill] sm:$0xff]  ;;  %v2859_v61 = vmax.f32 %v2491_v0, 0.0  ;;  %v2406_v0 = vadd.f32 %v4875_v6, %v6271_v21 }
 0x287   : >> { %4171 = vmatpush3.msra.mxu1 %v2804_v52  ;;  %v2486_v7 = vadd.f32 %v4875_v6, %v6262_v28  ;;  %v6263_v52 = vld [vmem:[#allocation32_spill] sm:$0xff]  ;;  %v6273_v28 = vld [vmem:[#allocation27_spill] sm:$0xff] }
 0x288   : >> { %4172 = vmatprep.subr.mxu1 %v2819_v15  ;;  %v2422_v18 = vadd.f32 %v4875_v6, %v6263_v52  ;;  %v5973_v15 = vpop.f32.mrf.mxu1 }
 0x289   : >> { %4173 = vmatpush3.msra.mxu1 %v2803_v19  ;;  %v6264_v19 = vld [vmem:[#allocation42_spill] sm:$0xff]  ;;  %v2858_v41 = vmax.f32 %v2486_v7, 0.0  ;;  %v2403_v7 = vadd.f32 %v4875_v6, %v6273_v28 }
 0x28a   : >> { %4174 = vmatprep.subr.mxu1 %v2818_v22  ;;  %v2483_v54 = vadd.f32 %v4875_v6, %v6264_v19  ;;  %v2843_v22 = vmax.f32 %v2427_v39, 0.0  ;;  %v5983_v26 = vpop.f32.mrf.mxu1  ;;  %v6272_v39 = vld [vmem:[#allocation38_spill] sm:$0xff] }
 0x28b   : >> { %4175 = vmatpush3.msra.mxu1 %v2802_v4  ;;  %v2419_v4 = vadd.f32 %v4875_v6, %v6265_v57  ;;  %v6276_v57 = vld [vmem:[#allocation33_spill] sm:$0xff] }
 0x28c   : >> { %4176 = vmatprep.subr.mxu1 %v2817_v49  ;;  %v2478_v49 = vadd.f32 %v6266_v23, %v4875_v6 }
 0x28d   : >> { %4177 = vmatpush3.msra.mxu1 %v2801_v14  ;;  %v6267_v14 = vld [vmem:[#allocation28_spill] sm:$0xff]  ;;  %v2841_v11 = vmax.f32 %v2419_v4, 0.0  ;;  %v2459_v4 = vadd.f32 %v6276_v57, %v4875_v6 }
 0x28e   : >> { %3826 = vmatmul.mubr.msk.f32.vlgmr.msra.gmra.mxu1 %vm4940_vm8, %v6216_v50  ;;  %4181 = vmatprep.subr.mxu1 %v2864_v45  ;;  %v2414_v53 = vadd.f32 %v6267_v14, %v4875_v6  ;;  %v2842_v45 = vmax.f32 %v2422_v18, 0.0  ;;  %v2856_v12 = vmax.f32 %v2478_v49, 0.0  ;;  %v6277_v49 = vld [vmem:[#allocation22_spill] sm:$0xff]  ;;  %v2837_v14 = vmax.f32 %v2403_v7, 0.0 }
 0x28f   : >> { %4182 = vmatpush3.msra.mxu1 %v2848_v59  ;;  %3827 = vmatprep.mubr.msk.f32.mxu1 %vm4954_vm3, %v6216_v50  ;;  %v6268_v59 = vld [vmem:[#allocation37_spill] sm:$0xff] }
 0x290   : >> { %4183 = vmatprep.subr.mxu1 %v2863_v32  ;;  %v2475_v10 = vadd.f32 %v6268_v59, %v4875_v6  ;;  %v2857_v32 = vmax.f32 %v2483_v54, 0.0  ;;  %v2838_v54 = vmax.f32 %v2406_v0, 0.0 }
 0x291   : >> { %4184 = vmatpush3.msra.mxu1 %v2847_v46  ;;  %v2411_v46 = vadd.f32 %v6269_v42, %v4875_v6 }
 0x292   : >> { %4185 = vmatprep.subr.mxu1 %v2862_v34  ;;  %v6270_v34 = vld [vmem:[#allocation40_spill] sm:$0xff]  ;;  %v2855_v47 = vmax.f32 %v2475_v10, 0.0 }
 0x293   : >> { %4186 = vmatpush3.msra.mxu1 %v2846_v56  ;;  %v2470_v3 = vadd.f32 %v4875_v6, %v6270_v34  ;;  %v2840_v56 = vmax.f32 %v2414_v53, 0.0 }
 0x294   : >> { %4187 = vmatprep.subr.mxu1 %v2861_v60  ;;  %v4511_v60 = vpop.f32.mrf.mxu1 }
 0x295   : >> { %4188 = vmatpush3.msra.mxu1 %v2845_v36  ;;  %v2467_v36 = vadd.f32 %v4875_v6, %v6272_v39  ;;  %v2854_v18 = vmax.f32 %v2470_v3, 0.0  ;;  %v2635_v7 = vadd.f32 %v4511_v60, %v4875_v6 }
 0x296   : >> { %4189 = vmatprep.subr.mxu1 %v2860_v13  ;;  %v2839_v13 = vmax.f32 %v2411_v46, 0.0 }
 0x297   : >> { %4190 = vmatpush3.msra.mxu1 %v2844_v17  ;;  %v6274_v17 = vld [vmem:[#allocation35_spill] sm:$0xff]  ;;  %v2853_v23 = vmax.f32 %v2467_v36, 0.0  ;;  %v2574_v36 = vadd.f32 %v5875_v55, %v4875_v6  ;;  %v2895_v55 = vmax.f32 %v2635_v7, 0.0 }
 0x298   : >> { %4191 = vmatprep.subr.mxu1 %v2859_v61  ;;  %v2462_v52 = vadd.f32 %v6274_v17, %v4875_v6  ;;  %v6275_v61 = vld [vmem:[#allocation24_spill] sm:$0xff] }
 0x299   : >> { %4192 = vmatpush3.msra.mxu1 %v2843_v22  ;;  %v2398_v19 = vadd.f32 %v6275_v61, %v4875_v6  ;;  %v2626_v22 = vpop.f32.mrf.mxu1 }
 0x29a   : >> { %4193 = vmatprep.subr.mxu1 %v2858_v41  ;;  %v2395_v41 = vadd.f32 %v6277_v49, %v4875_v6  ;;  %v2852_v53 = vmax.f32 %v2462_v52, 0.0  ;;  %v2571_v52 = vadd.f32 %v5856_v62, %v4875_v6  ;;  %v2627_v57 = vadd.f32 %v4875_v6, %v2626_v22 }
 0x29b   : >> { %4194 = vmatpush3.msra.mxu1 %v2842_v45  ;;  %v6278_v45 = vld [vmem:[#allocation36_spill] sm:$0xff]  ;;  %v2836_v10 = vmax.f32 %v2398_v19, 0.0  ;;  %v4512_v46 = vpop.f32.mrf.mxu1  ;;  %v2880_v19 = vmax.f32 %v2574_v36, 0.0  ;;  %v2563_v62 = vadd.f32 %v4875_v6, %v5871_v24  ;;  %v2558_v22 = vadd.f32 %v5837_v16, %v4875_v6 }
 0x29c   : >> { %4195 = vmatprep.subr.mxu1 %v2857_v32  ;;  %v2454_v59 = vadd.f32 %v4875_v6, %v6278_v45  ;;  %v6279_v32 = vld [vmem:[#allocation25_spill] sm:$0xff]  ;;  %v2835_v3 = vmax.f32 %v2395_v41, 0.0  ;;  %v2555_v24 = vadd.f32 %v5811_v33, %v4875_v6  ;;  %v2550_v16 = vadd.f32 %v4875_v6, %v5845_v43 }
 0x29d   : >> { %4196 = vmatpush3.msra.mxu1 %v2841_v11  ;;  %v2390_v42 = vadd.f32 %v4875_v6, %v6279_v32  ;;  %v2851_v11 = vmax.f32 %v2459_v4, 0.0  ;;  %v2879_v4 = vmax.f32 %v2571_v52, 0.0  ;;  %v2877_v45 = vmax.f32 %v2563_v62, 0.0 }
 0x29e   : >> { %4197 = vmatprep.subr.mxu1 %v2856_v12  ;;  %v6280_v12 = vld [vmem:[#allocation34_spill] sm:$0xff]  ;;  %v2850_v0 = vmax.f32 %v2454_v59, 0.0  ;;  %v2547_v33 = vadd.f32 %v4875_v6, %v5825_v30  ;;  %v2874_v43 = vmax.f32 %v2550_v16, 0.0 }
 0x29f   : >> { %4198 = vmatpush3.msra.mxu1 %v2840_v56  ;;  %v2451_v34 = vadd.f32 %v4875_v6, %v6280_v12  ;;  %v6281_v56 = vld [vmem:[#allocation23_spill] sm:$0xff]  ;;  %v2834_v39 = vmax.f32 %v2390_v42, 0.0  ;;  %v2875_v42 = vmax.f32 %v2555_v24, 0.0  ;;  %v2603_v12 = vadd.f32 %v5908_v48, %v4875_v6 }
 0x2a0   : >> { %4199 = vmatprep.subr.mxu1 %v2855_v47  ;;  %v2387_v21 = vadd.f32 %v4875_v6, %v6281_v56  ;;  %v2638_v47 = vadd.f32 %v4512_v46, %v4875_v6  ;;  %v2606_v46 = vadd.f32 %v5927_v27, %v4875_v6  ;;  %v2873_v30 = vmax.f32 %v2547_v33, 0.0 }
 0x2a1   : >> { %4200 = vmatpush3.msra.mxu1 %v2839_v13  ;;  %v2629_v13 = vpop.f32.mrf.mxu1  ;;  %v2849_v28 = vmax.f32 %v2451_v34, 0.0  ;;  %v2539_v34 = vadd.f32 %v5762_v44, %v4875_v6  ;;  %v2598_v27 = vadd.f32 %v4875_v6, %v5937_v8  ;;  %v2595_v48 = vadd.f32 %v4875_v6, %v5917_v9 }
 0x2a2   : >> { %4201 = vmatprep.subr.mxu1 %v2854_v18  ;;  %v2833_v17 = vmax.f32 %v2387_v21, 0.0  ;;  %v2896_v18 = vmax.f32 %v2638_v47, 0.0  ;;  %v2630_v61 = vadd.f32 %v4875_v6, %v2629_v13  ;;  %v2887_v21 = vmax.f32 %v2603_v12, 0.0 }
 0x2a3   : >> { %4202 = vmatpush3.msra.mxu1 %v2838_v54  ;;  %v2566_v54 = vadd.f32 %v4875_v6, %v5877_v1  ;;  %v2622_v1 = vadd.f32 %v5973_v15, %v4875_v6  ;;  %v2614_v15 = vadd.f32 %v4875_v6, %v5983_v26  ;;  %v2531_v44 = vadd.f32 %v4875_v6, %v5773_v25 }
 0x2a4   : >> { %4203 = vmatprep.subr.mxu1 %v2853_v23  ;;  %v2894_v49 = vmax.f32 %v2630_v61, 0.0  ;;  %v2590_v47 = vadd.f32 %v5892_v51, %v4875_v6  ;;  %v2886_v8 = vmax.f32 %v2598_v27, 0.0  ;;  %v2587_v13 = vadd.f32 %v5879_v29, %v4875_v6 }
 0x2a5   : >> { %4204 = vmatpush3.msra.mxu1 %v2837_v14  ;;  %v2878_v41 = vmax.f32 %v2566_v54, 0.0  ;;  %v2619_v14 = vadd.f32 %v5947_v63, %v4875_v6  ;;  %v2892_v59 = vmax.f32 %v2622_v1, 0.0  ;;  %v2611_v63 = vadd.f32 %v4875_v6, %v5963_v58 }
 0x2a6   : >> { %4205 = vmatprep.subr.mxu1 %v2852_v53  ;;  %v2893_v53 = vmax.f32 %v2627_v57, 0.0  ;;  %v2890_v26 = vmax.f32 %v2614_v15, 0.0  ;;  %v2885_v9 = vmax.f32 %v2595_v48, 0.0  ;;  %v2869_v25 = vmax.f32 %v2531_v44, 0.0 }
 0x2a7   : >> { %4206 = vmatpush3.msra.mxu1 %v2836_v10  ;;  %v2876_v10 = vmax.f32 %v2558_v22, 0.0  ;;  %v2891_v32 = vmax.f32 %v2619_v14, 0.0  ;;  %v2889_v58 = vmax.f32 %v2611_v63, 0.0  ;;  %v2582_v51 = vadd.f32 %v4875_v6, %v5900_v31 }
 0x2a8   : >> { %4207 = vmatprep.subr.mxu1 %v2851_v11  ;;  %v2542_v11 = vadd.f32 %v5785_v5, %v4875_v6  ;;  %v2534_v5 = vadd.f32 %v4875_v6, %v5797_v20  ;;  %v2579_v29 = vadd.f32 %v4875_v6, %v5883_v2  ;;  %v4003_v2 = vpop.f32.mrf.mxu1 }
 0x2a9   : >> { %4208 = vmatpush3.msra.mxu1 %v2835_v3  ;;  %v2888_v3 = vmax.f32 %v2606_v46, 0.0  ;;  %v2882_v60 = vmax.f32 %v2582_v51, 0.0 }
 0x2aa   : >> { %4209 = vmatprep.subr.mxu1 %v2850_v0  ;;  %v2872_v56 = vmax.f32 %v2542_v11, 0.0  ;;  %v2871_v0 = vmax.f32 %v2539_v34, 0.0  ;;  %v2870_v20 = vmax.f32 %v2534_v5, 0.0  ;;  %v2881_v31 = vmax.f32 %v2579_v29, 0.0  ;;  %v4004_v1 = vpop.f32.mrf.mxu1 }
 0x2ab   : >> { %4210 = vmatpush3.msra.mxu1 %v2834_v39  ;;  %v6284_v39 = vld [vmem:[#allocation46_spill] sm:$0xff] }
 0x2ac   : >> { %4211 = vmatprep.subr.mxu1 %v2849_v28  ;;  %v2526_v36 = vadd.f32 %v6284_v39, %v4875_v6  ;;  %v6285_v28 = vld [vmem:[#allocation44_spill] sm:$0xff] }
 0x2ad   : >> { %4212 = vmatpush3.msra.mxu1 %v2833_v17  ;;  %v2523_v7 = vadd.f32 %v6285_v28, %v4875_v6  ;;  %v2884_v17 = vmax.f32 %v2590_v47, 0.0 }
 0x2ae   : >> { %3828 = vmatmul.mubr.msk.f32.vlgmr.msra.gmra.mxu1 %vm4950_vm7, %v6216_v50  ;;  %4216 = vmatprep.subr.mxu1 %v2896_v18  ;;  %v2868_v52 = vmax.f32 %v2526_v36, 0.0  ;;  %v6286_v18 = vld [vmem:[#allocation47_spill] sm:$0xff] }
 0x2af   : >> { %4217 = vmatpush3.msra.mxu1 %v2880_v19  ;;  %3829 = vmatprep.mubr.msk.f32.mxu1 %vm4962_vm10, %v6216_v50  ;;  %v2518_v61 = vadd.f32 %v4875_v6, %v6286_v18  ;;  %v2883_v19 = vmax.f32 %v2587_v13, 0.0  ;;  %v2867_v54 = vmax.f32 %v2523_v7, 0.0 }
 0x2b0   : >> { %4218 = vmatprep.subr.mxu1 %v2895_v55  ;;  %v6287_v55 = vld [vmem:[#allocation45_spill] sm:$0xff] }
 0x2b1   : >> { %4219 = vmatpush3.msra.mxu1 %v2879_v4  ;;  %v2515_v57 = vadd.f32 %v4875_v6, %v6287_v55  ;;  %v2866_v4 = vmax.f32 %v2518_v61, 0.0 }
 0x2b2   : >> { %4220 = vmatprep.subr.mxu1 %v2894_v49  ;;  %v4038_v49 = vpop.f32.mrf.mxu1 }
 0x2b3   : >> { %4221 = vmatpush3.msra.mxu1 %v2878_v41  ;;  %v2865_v62 = vmax.f32 %v2515_v57, 0.0 }
 0x2b4   : >> { %4222 = vmatprep.subr.mxu1 %v2893_v53  ;;  %v4039_v22 = vpop.f32.mrf.mxu1 }
 0x2b5   : >> { %4223 = vmatpush3.msra.mxu1 %v2877_v45  ;;  %v4040_v16 = vadd.f32 %v4039_v22, %v4038_v49 }
 0x2b6   : >> { %4224 = vmatprep.subr.mxu1 %v2892_v59  ;;  %v4073_v41 = vpop.f32.mrf.mxu1 }
 0x2b7   : >> { %4225 = vmatpush3.msra.mxu1 %v2876_v10  ;;  %v4005_v10 = vadd.f32 %v4004_v1, %v4003_v2 }
 0x2b8   : >> { %4226 = vmatprep.subr.mxu1 %v2891_v32  ;;  %v4074_v14 = vpop.f32.mrf.mxu1 }
 0x2b9   : >> { %4227 = vmatpush3.msra.mxu1 %v2875_v42  ;;  %v3034_v63 = vadd.f32 %v4040_v16, %v4005_v10  ;;  %v4075_v42 = vadd.f32 %v4074_v14, %v4073_v41 }
 0x2ba   : >> { %4228 = vmatprep.subr.mxu1 %v2890_v26 }
 0x2bb   : >> { %4229 = vmatpush3.msra.mxu1 %v2874_v43  ;;  %v3104_v46 = vadd.f32 %v4075_v42, %v3034_v63 }
 0x2bc   : >> { %4230 = vmatprep.subr.mxu1 %v2889_v58 }
 0x2bd   : >> { %4231 = vmatpush3.msra.mxu1 %v2873_v30 }
 0x2be   : >> { %4232 = vmatprep.subr.mxu1 %v2888_v3 }
 0x2bf   : >> { %4233 = vmatpush3.msra.mxu1 %v2872_v56 }
 0x2c0   : >> { %4234 = vmatprep.subr.mxu1 %v2887_v21 }
 0x2c1   : >> { %4235 = vmatpush3.msra.mxu1 %v2871_v0 }
 0x2c2   : >> { %4236 = vmatprep.subr.mxu1 %v2886_v8 }
 0x2c3   : >> { %4237 = vmatpush3.msra.mxu1 %v2870_v20 }
 0x2c4   : >> { %4238 = vmatprep.subr.mxu1 %v2885_v9 }
 0x2c5   : >> { %4239 = vmatpush3.msra.mxu1 %v2869_v25 }
 0x2c6   : >> { %4240 = vmatprep.subr.mxu1 %v2884_v17 }
 0x2c7   : >> { %4241 = vmatpush3.msra.mxu1 %v2868_v52 }
 0x2c8   : >> { %4242 = vmatprep.subr.mxu1 %v2883_v19 }
 0x2c9   : >> { %4243 = vmatpush3.msra.mxu1 %v2867_v54 }
 0x2ca   : >> { %4244 = vmatprep.subr.mxu1 %v2882_v60 }
 0x2cb   : >> { %4245 = vmatpush3.msra.mxu1 %v2866_v4 }
 0x2cc   : >> { %4246 = vmatprep.subr.mxu1 %v2881_v31 }
 0x2cd   : >> { %4247 = vmatpush3.msra.mxu1 %v2865_v62 }
 0x2ce   : >> { %3830 = vmatmul.mubr.msk.f32.vlgmr.msra.gmra.mxu1 %vm4958_vm9, %v6216_v50 }
 0x2de   : >> { %v4108_v53 = vpop.f32.mrf.mxu1 }
 0x2e0   : >> { %v4109_v24 = vpop.f32.mrf.mxu1 }
 0x2e1   : >> { %v4110_v50 = vadd.f32 %v4109_v24, %v4108_v53 }
 0x2e3   : >> { %v3174_v43 = vadd.f32 %v4110_v50, %v3104_v46 }
 0x31e   : >> { %v4143_v45 = vpop.f32.mrf.mxu1 }
 0x320   : >> { %v4144_v59 = vpop.f32.mrf.mxu1 }
 0x321   : >> { %v4145_v26 = vadd.f32 %v4144_v59, %v4143_v45 }
 0x323   : >> { %v3244_v58 = vadd.f32 %v4145_v26, %v3174_v43 }
 0x34e   : >> { %v4178_v15 = vpop.f32.mrf.mxu1 }
 0x350   : >> { %v4179_v32 = vpop.f32.mrf.mxu1 }
 0x351   : >> { %v4180_v12 = vadd.f32 %v4179_v32, %v4178_v15 }
 0x353   : >> { %v3314_v3 = vadd.f32 %v4180_v12, %v3244_v58 }
 0x36e   : >> { %v4213_v33 = vpop.f32.mrf.mxu1 }
 0x370   : >> { %v4214_v11 = vpop.f32.mrf.mxu1 }
 0x371   : >> { %v4215_v34 = vadd.f32 %v4214_v11, %v4213_v33 }
 0x373   : >> { %v3384_v56 = vadd.f32 %v4215_v34, %v3314_v3 }
 0x38e   : >> { %v4248_v30 = vpop.f32.mrf.mxu1 }
 0x390   : >> { %v4249_v27 = vpop.f32.mrf.mxu1 }
 0x391   : >> { %v4250_v5 = vadd.f32 %v4249_v27, %v4248_v30  ;;  %272 = sbr.rel (!%p270_p11) target bundleno = 46 (0x2e), region = 76 }
 0x393   : >> { %v3454_v21 = vadd.f32 %v4250_v5, %v3384_v56 }
 0x395   : >> { %3458 = vst [vmem:[%s3457_s5] sm:$0xff] %v3454_v21 }
 0x396   : > { %4712 = shalt.err (!%p4709_p4)
}
 0x397   : > { %s4713_s24 = scalar_lea.hbm %s6092_s9, 256  ;;  %s4717_s25 = scalar_lea.hbm %s6143_s3, 512 }
 0x398   : > { %p4714_p7 = scmp.ne.s32.totalorder %s6092_s9, %s4713_s24  ;;  %p4718_p10 = scmp.lt.s32.totalorder %s6092_s9, %s6143_s3 }
 0x399   : > { %p4719_p11 = scmp.lt.s32.totalorder %s4717_s25, %s4713_s24 }
 0x39a   : > { %p4715_p8 = pnand %p4714_p7, %p4831_p5 }
 0x39b   : > { %p4720_p12 = por %p4719_p11, %p4718_p10 }
 0x39c   : > { %p4716_p9 = pneg %p4715_p8 }
 0x39e   : > { %p4721_p13 = pnand %p4720_p12, %p4716_p9 }
 0x3a0   : > { %4724 = shalt.err (!%p4721_p13)
}
 0x3a1   : > { %s4771_s29 = smov 128   ;;  %s4772_s4 = smov 8  }
 0x3a2   : > { %4521 = dma.vmem_to_hbm [thread:$0]  (%p4831_p5), %s6096_s10, 256, %s6092_s9, %s6100_s11, %s4771_s29, %s4771_s29, %s4772_s4  }
 0x3a3 PF: > { %p4527_p0 = scmp.ge.s32.totalorder %s4763_s15, 2  ;;  %s3488_s5 = sand.u32 1, %s4751_s12  }
 0x3a4   : > { %s3489_s6 = scalar_lea.sflag [#allocation3], %s3488_s5 }
 0x3a5   : > { %p4524_p1 = pnand %p4527_p0, %p4835_p6 }
 0x3a7   : > { %p4525_p2 = pneg %p4524_p1 }
 0x3a9   : > { %4746 = dma.done.wait (%p4525_p2), %s3489_s6, 256  }
 0x3aa   : > { %4748 = vsyncadd (%p4525_p2), %s3489_s6, 4294967040  ;;  %p13_p3 = scmp.ge.s32.totalorder %s4818_s18, 4   ;;  %s6289_s12 = smov %s4755_s13 }
 0x3ab   : > { %s6290_s13 = smov %s4759_s14  ;;  %s6291_s14 = smov %s4829_s21 }
 0x3ac   : > { %s6292_s15 = smov %s4818_s18  ;;  %15 = sbr.rel (!%p13_p3) target bundleno = 3 (0x3), region = 87 }
 0x3b1   :  { %3494 = vsyncpa [#allocation3], 1 }
 0x3b2   :  { %3496 = vsyncpa [#allocation3 + $0x1], 1 }

</bundles_post_ra>
